<compile_context>
chip_gen: v6e
topology: v6e:2x2x1
jax: 0.10.0
libtpu: 0.0.40
codegen_flags: <defaults>
</compile_context>

<pallas_src>
import jax
import jax.numpy as jnp
from jax.experimental import pallas as pl
from jax.experimental.pallas import tpu as pltpu


def analysis_gru_kernel(x_ref, wih_ref, whh_ref, bgi_ref, bhn_ref,
                        w1_ref, b1_ref, w2_ref, b2_ref,
                        ht_ref, logp_ref, hlast_ref):
    Bb, T = x_ref.shape
    H = whh_ref.shape[0]

    wih = wih_ref[...]          # (1, 3H)   PyTorch weight_ih_l0^T (input_size = 1)
    whh = whh_ref[...]          # (H, 3H)   PyTorch weight_hh_l0^T
    bgi = bgi_ref[...]          # (1, 3H)   b_ih + [b_hr, b_hz, 0]  (bias fold for r,z)
    bhn = bhn_ref[...]          # (1, H)    b_hn (must stay on the hidden-side n term)

    # ---- Hoisted input projection for ALL timesteps (off the recurrent critical path) ---
    x_bt = x_ref[...]                       # (Bb, T)
    gi_all = []
    for t in range(T):
        x_t = x_bt[:, t:t + 1]              # (Bb, 1), static lane slice
        gi_all.append(x_t * wih + bgi)      # (Bb, 3H)

    # ---- Fully unrolled GRU recurrence (gate order r, z, n; PyTorch semantics) ----------
    h = jnp.zeros((Bb, H), jnp.float32)
    for t in range(T):
        gi = gi_all[t]                                                  # (Bb, 3H)
        gh = jnp.dot(h, whh, preferred_element_type=jnp.float32)        # (Bb, 3H)
        rz = jax.nn.sigmoid(gi[:, :2 * H] + gh[:, :2 * H])              # fused r,z sigmoid
        r = rz[:, :H]
        z = rz[:, H:]
        n = jnp.tanh(gi[:, 2 * H:] + r * (gh[:, 2 * H:] + bhn))
        h = n + z * (h - n)                                             # == (1-z)*n + z*h
        ht_ref[:, t, :] = h                 # write batch-first layout directly

    hlast_ref[...] = h                      # final hidden state (B, H)

    # ---- Head: fc1 -> relu -> dropout(eval) -> fc2 -> relu -> log_softmax ---------------
    y1 = jnp.maximum(
        jnp.dot(h, w1_ref[...], preferred_element_type=jnp.float32) + b1_ref[...], 0.0)
    # TODO(synk): nn.Dropout(0.2) is identity at inference; training-mode dropout not implemented.
    y2 = jnp.maximum(
        jnp.dot(y1, w2_ref[...], preferred_element_type=jnp.float32) + b2_ref[...], 0.0)
    m = jnp.max(y2, axis=1, keepdims=True)
    lse = m + jnp.log(jnp.sum(jnp.exp(y2 - m), axis=1, keepdims=True))
    logp_ref[...] = y2 - lse


def analysis_gru_forward(x, params):
    """x: (B, T) float32 (the PyTorch module views it as (B, T, 1)).

    Returns (log_probs (B, L), ht (B, T, H), hidden (1, B, H)) like the module's
    (X, ht, hidden)."""
    wih, whh, bih, bhh, w1, b1, w2, b2 = params
    B, T = x.shape
    H = whh.shape[0]
    L = w2.shape[1]

    # Bias folding (tiny (1,3H) op): b_ih + b_hh for the r,z gates; b_hn kept separate.
    bgi = (bih + jnp.concatenate(
        [bhh[:, :2 * H], jnp.zeros((1, H), bhh.dtype)], axis=1)).astype(jnp.float32)
    bhn = bhh[:, 2 * H:].astype(jnp.float32)

    # Batch block: shard independent sequences across the grid ("parallel" -> megacore).
    B_BLK = B if B <= 128 else (128 if B % 128 == 0 else B)
    assert B % B_BLK == 0
    grid = (B // B_BLK,)

    def rep_spec(a):
        nd = a.ndim
        return pl.BlockSpec(a.shape, lambda i, nd=nd: (0,) * nd)

    in_specs = [
        pl.BlockSpec((B_BLK, T), lambda i: (i, 0)),        # x
        rep_spec(wih), rep_spec(whh), rep_spec(bgi), rep_spec(bhn),
        rep_spec(w1), rep_spec(b1), rep_spec(w2), rep_spec(b2),
    ]
    out_specs = [
        pl.BlockSpec((B_BLK, T, H), lambda i: (i, 0, 0)),  # ht, batch-first, final layout
        pl.BlockSpec((B_BLK, L), lambda i: (i, 0)),        # log-probs
        pl.BlockSpec((B_BLK, H), lambda i: (i, 0)),        # h_last
    ]
    out_shape = (
        jax.ShapeDtypeStruct((B, T, H), jnp.float32),
        jax.ShapeDtypeStruct((B, L), jnp.float32),
        jax.ShapeDtypeStruct((B, H), jnp.float32),
    )

    ht, logp, h_last = pl.pallas_call(
        analysis_gru_kernel,
        grid=grid,
        in_specs=in_specs,
        out_specs=out_specs,
        out_shape=out_shape,
        compiler_params=pltpu.CompilerParams(
            dimension_semantics=("parallel",)),
    )(x.astype(jnp.float32), wih.astype(jnp.float32), whh.astype(jnp.float32),
      bgi, bhn, w1.astype(jnp.float32), b1.astype(jnp.float32),
      w2.astype(jnp.float32), b2.astype(jnp.float32))

    hidden = h_last[None]                                  # (num_layers=1, B, H) -- free reshape
    return logp, ht, hidden


def _reference_forward(x, params):
    """Pure-JAX reference with PyTorch nn.GRU gate math (for correctness check)."""
    wih, whh, bih, bhh, w1, b1, w2, b2 = params
    B, T = x.shape
    H = whh.shape[0]
    h = jnp.zeros((B, H), jnp.float32)
    hts = []
    for t in range(T):
        x_t = x[:, t:t + 1]
        gi = x_t * wih + bih
        gh = h @ whh + bhh
        r = jax.nn.sigmoid(gi[:, :H] + gh[:, :H])
        z = jax.nn.sigmoid(gi[:, H:2 * H] + gh[:, H:2 * H])
        n = jnp.tanh(gi[:, 2 * H:] + r * gh[:, 2 * H:])
        h = (1.0 - z) * n + z * h
        hts.append(h)
    ht = jnp.stack(hts, axis=1)
    y1 = jax.nn.relu(h @ w1 + b1)
    y2 = jax.nn.relu(y1 @ w2 + b2)
    logp = jax.nn.log_softmax(y2, axis=1)
    return logp, ht, h[None]


def init_params(key, hidden_size, num_labels):
    """Deterministic uniform(-1/sqrt(H), 1/sqrt(H)) init; PyTorch shapes, pre-transposed."""
    H, L = hidden_size, num_labels
    k = 1.0 / jnp.sqrt(jnp.float32(H))
    ks = jax.random.split(key, 8)
    u = lambda kk, shape: jax.random.uniform(kk, shape, jnp.float32, -k, k)
    wih = u(ks[0], (1, 3 * H))        # weight_ih_l0^T (input_size = 1), gate order [r, z, n]
    whh = u(ks[1], (H, 3 * H))        # weight_hh_l0^T
    bih = u(ks[2], (1, 3 * H))
    bhh = u(ks[3], (1, 3 * H))
    w1 = u(ks[4], (H, H))             # fc1.weight^T
    b1 = u(ks[5], (1, H))
    w2 = u(ks[6], (H, L))             # fc2.weight^T
    b2 = u(ks[7], (1, L))
    return (wih, whh, bih, bhh, w1, b1, w2, b2)


if __name__ == "__main__":
    B, T, H = 8, 8, 32
    labels = [0, 1, 2, 3]
    L = len(labels)

    root = jax.random.PRNGKey(0)
    kp, kx = jax.random.split(root)
    params = init_params(kp, H, L)
    x = jax.random.normal(kx, (B, T), dtype=jnp.float32)

    fwd = jax.jit(analysis_gru_forward)
    logp, ht, hidden = fwd(x, params)
    jax.block_until_ready((logp, ht, hidden))

    assert logp.shape == (B, L)
    assert ht.shape == (B, T, H)
    assert hidden.shape == (1, B, H)

    # Numerical check against the pure-JAX PyTorch-parity reference.
    logp_r, ht_r, hidden_r = _reference_forward(x, params)
    assert float(jnp.max(jnp.abs(logp - logp_r))) < 2e-4
    assert float(jnp.max(jnp.abs(ht - ht_r))) < 2e-4
    assert float(jnp.max(jnp.abs(hidden - hidden_r))) < 2e-4

    print("KERNEL_OK")
</pallas_src>

<mosaic_0001>
module attributes {stable_mosaic.version = 11 : i64} {
  func.func @analysis_gru_kernel(%arg0: i32, %arg1: memref<8x8xf32, #tpu.memory_space<vmem>>, %arg2: memref<1x96xf32, #tpu.memory_space<vmem>>, %arg3: memref<32x96xf32, #tpu.memory_space<vmem>>, %arg4: memref<1x96xf32, #tpu.memory_space<vmem>>, %arg5: memref<1x32xf32, #tpu.memory_space<vmem>>, %arg6: memref<32x32xf32, #tpu.memory_space<vmem>>, %arg7: memref<1x32xf32, #tpu.memory_space<vmem>>, %arg8: memref<32x4xf32, #tpu.memory_space<vmem>>, %arg9: memref<1x4xf32, #tpu.memory_space<vmem>>, %arg10: memref<8x8x32xf32, #tpu.memory_space<vmem>>, %arg11: memref<8x4xf32, #tpu.memory_space<vmem>>, %arg12: memref<8x32xf32, #tpu.memory_space<vmem>>) attributes {dimension_semantics = [#tpu.dimension_semantics<parallel>], iteration_bounds = array<i64: 1>, scalar_prefetch = 0 : i64, scratch_operands = 0 : i64, tpu.core_type = #tpu.core_type<tc>, window_params = [{transform_indices = @transform_0, window_bounds = array<i64: 8, 8>}, {pipeline_mode = #tpu.pipeline_mode<synchronous>, transform_indices = @transform_1, window_bounds = array<i64: 1, 96>}, {pipeline_mode = #tpu.pipeline_mode<synchronous>, transform_indices = @transform_2, window_bounds = array<i64: 32, 96>}, {pipeline_mode = #tpu.pipeline_mode<synchronous>, transform_indices = @transform_3, window_bounds = array<i64: 1, 96>}, {pipeline_mode = #tpu.pipeline_mode<synchronous>, transform_indices = @transform_4, window_bounds = array<i64: 1, 32>}, {pipeline_mode = #tpu.pipeline_mode<synchronous>, transform_indices = @transform_5, window_bounds = array<i64: 32, 32>}, {pipeline_mode = #tpu.pipeline_mode<synchronous>, transform_indices = @transform_6, window_bounds = array<i64: 1, 32>}, {pipeline_mode = #tpu.pipeline_mode<synchronous>, transform_indices = @transform_7, window_bounds = array<i64: 32, 4>}, {pipeline_mode = #tpu.pipeline_mode<synchronous>, transform_indices = @transform_8, window_bounds = array<i64: 1, 4>}, {transform_indices = @transform_9, window_bounds = array<i64: 8, 8, 32>}, {transform_indices = @transform_10, window_bounds = array<i64: 8, 4>}, {transform_indices = @transform_11, window_bounds = array<i64: 8, 32>}]} {
    %c0 = arith.constant 0 : index
    %c0_0 = arith.constant 0 : index
    %0 = vector.load %arg2[%c0, %c0_0] : memref<1x96xf32, #tpu.memory_space<vmem>>, vector<1x96xf32>
    %c0_1 = arith.constant 0 : index
    %c0_2 = arith.constant 0 : index
    %1 = vector.load %arg3[%c0_1, %c0_2] : memref<32x96xf32, #tpu.memory_space<vmem>>, vector<32x96xf32>
    %c0_3 = arith.constant 0 : index
    %c0_4 = arith.constant 0 : index
    %2 = vector.load %arg4[%c0_3, %c0_4] : memref<1x96xf32, #tpu.memory_space<vmem>>, vector<1x96xf32>
    %c0_5 = arith.constant 0 : index
    %c0_6 = arith.constant 0 : index
    %3 = vector.load %arg5[%c0_5, %c0_6] : memref<1x32xf32, #tpu.memory_space<vmem>>, vector<1x32xf32>
    %c0_7 = arith.constant 0 : index
    %c0_8 = arith.constant 0 : index
    %4 = vector.load %arg1[%c0_7, %c0_8] : memref<8x8xf32, #tpu.memory_space<vmem>>, vector<8x8xf32>
    %5 = vector.extract_strided_slice %4 {offsets = [0, 0], sizes = [8, 1], strides = [1, 1]} : vector<8x8xf32> to vector<8x1xf32>
    %6 = vector.broadcast %5 : vector<8x1xf32> to vector<8x96xf32>
    %7 = vector.broadcast %0 : vector<1x96xf32> to vector<8x96xf32>
    %8 = arith.mulf %6, %7 : vector<8x96xf32>
    %9 = vector.broadcast %2 : vector<1x96xf32> to vector<8x96xf32>
    %10 = arith.addf %8, %9 : vector<8x96xf32>
    %11 = vector.extract_strided_slice %4 {offsets = [0, 1], sizes = [8, 1], strides = [1, 1]} : vector<8x8xf32> to vector<8x1xf32>
    %12 = vector.broadcast %11 : vector<8x1xf32> to vector<8x96xf32>
    %13 = vector.broadcast %0 : vector<1x96xf32> to vector<8x96xf32>
    %14 = arith.mulf %12, %13 : vector<8x96xf32>
    %15 = vector.broadcast %2 : vector<1x96xf32> to vector<8x96xf32>
    %16 = arith.addf %14, %15 : vector<8x96xf32>
    %17 = vector.extract_strided_slice %4 {offsets = [0, 2], sizes = [8, 1], strides = [1, 1]} : vector<8x8xf32> to vector<8x1xf32>
    %18 = vector.broadcast %17 : vector<8x1xf32> to vector<8x96xf32>
    %19 = vector.broadcast %0 : vector<1x96xf32> to vector<8x96xf32>
    %20 = arith.mulf %18, %19 : vector<8x96xf32>
    %21 = vector.broadcast %2 : vector<1x96xf32> to vector<8x96xf32>
    %22 = arith.addf %20, %21 : vector<8x96xf32>
    %23 = vector.extract_strided_slice %4 {offsets = [0, 3], sizes = [8, 1], strides = [1, 1]} : vector<8x8xf32> to vector<8x1xf32>
    %24 = vector.broadcast %23 : vector<8x1xf32> to vector<8x96xf32>
    %25 = vector.broadcast %0 : vector<1x96xf32> to vector<8x96xf32>
    %26 = arith.mulf %24, %25 : vector<8x96xf32>
    %27 = vector.broadcast %2 : vector<1x96xf32> to vector<8x96xf32>
    %28 = arith.addf %26, %27 : vector<8x96xf32>
    %29 = vector.extract_strided_slice %4 {offsets = [0, 4], sizes = [8, 1], strides = [1, 1]} : vector<8x8xf32> to vector<8x1xf32>
    %30 = vector.broadcast %29 : vector<8x1xf32> to vector<8x96xf32>
    %31 = vector.broadcast %0 : vector<1x96xf32> to vector<8x96xf32>
    %32 = arith.mulf %30, %31 : vector<8x96xf32>
    %33 = vector.broadcast %2 : vector<1x96xf32> to vector<8x96xf32>
    %34 = arith.addf %32, %33 : vector<8x96xf32>
    %35 = vector.extract_strided_slice %4 {offsets = [0, 5], sizes = [8, 1], strides = [1, 1]} : vector<8x8xf32> to vector<8x1xf32>
    %36 = vector.broadcast %35 : vector<8x1xf32> to vector<8x96xf32>
    %37 = vector.broadcast %0 : vector<1x96xf32> to vector<8x96xf32>
    %38 = arith.mulf %36, %37 : vector<8x96xf32>
    %39 = vector.broadcast %2 : vector<1x96xf32> to vector<8x96xf32>
    %40 = arith.addf %38, %39 : vector<8x96xf32>
    %41 = vector.extract_strided_slice %4 {offsets = [0, 6], sizes = [8, 1], strides = [1, 1]} : vector<8x8xf32> to vector<8x1xf32>
    %42 = vector.broadcast %41 : vector<8x1xf32> to vector<8x96xf32>
    %43 = vector.broadcast %0 : vector<1x96xf32> to vector<8x96xf32>
    %44 = arith.mulf %42, %43 : vector<8x96xf32>
    %45 = vector.broadcast %2 : vector<1x96xf32> to vector<8x96xf32>
    %46 = arith.addf %44, %45 : vector<8x96xf32>
    %47 = vector.extract_strided_slice %4 {offsets = [0, 7], sizes = [8, 1], strides = [1, 1]} : vector<8x8xf32> to vector<8x1xf32>
    %48 = vector.broadcast %47 : vector<8x1xf32> to vector<8x96xf32>
    %49 = vector.broadcast %0 : vector<1x96xf32> to vector<8x96xf32>
    %50 = arith.mulf %48, %49 : vector<8x96xf32>
    %51 = vector.broadcast %2 : vector<1x96xf32> to vector<8x96xf32>
    %52 = arith.addf %50, %51 : vector<8x96xf32>
    %cst = arith.constant 0.000000e+00 : f32
    %53 = vector.broadcast %cst : f32 to vector<8x32xf32>
    %cst_9 = arith.constant dense<0.000000e+00> : vector<8x96xf32>
    %54 = tpu.matmul %53, %1, %cst_9 {dimension_numbers = #tpu.dot_dimension_numbers<[1], [0], [0], [1], [0, 0, 1, 1], [], []>} : vector<8x32xf32>, vector<32x96xf32>, vector<8x96xf32> -> vector<8x96xf32>
    %55 = vector.extract_strided_slice %10 {offsets = [0, 0], sizes = [8, 64], strides = [1, 1]} : vector<8x96xf32> to vector<8x64xf32>
    %56 = vector.extract_strided_slice %54 {offsets = [0, 0], sizes = [8, 64], strides = [1, 1]} : vector<8x96xf32> to vector<8x64xf32>
    %57 = arith.addf %55, %56 : vector<8x64xf32>
    %58 = arith.negf %57 : vector<8x64xf32>
    %59 = math.exp %58 : vector<8x64xf32>
    %cst_10 = arith.constant 1.000000e+00 : f32
    %60 = vector.broadcast %cst_10 : f32 to vector<8x64xf32>
    %61 = arith.addf %60, %59 : vector<8x64xf32>
    %62 = arith.divf %60, %61 : vector<8x64xf32>
    %63 = vector.extract_strided_slice %62 {offsets = [0, 0], sizes = [8, 32], strides = [1, 1]} : vector<8x64xf32> to vector<8x32xf32>
    %64 = vector.extract_strided_slice %62 {offsets = [0, 32], sizes = [8, 32], strides = [1, 1]} : vector<8x64xf32> to vector<8x32xf32>
    %65 = vector.extract_strided_slice %10 {offsets = [0, 64], sizes = [8, 32], strides = [1, 1]} : vector<8x96xf32> to vector<8x32xf32>
    %66 = vector.extract_strided_slice %54 {offsets = [0, 64], sizes = [8, 32], strides = [1, 1]} : vector<8x96xf32> to vector<8x32xf32>
    %67 = vector.broadcast %3 : vector<1x32xf32> to vector<8x32xf32>
    %68 = arith.addf %66, %67 : vector<8x32xf32>
    %69 = arith.mulf %63, %68 : vector<8x32xf32>
    %70 = arith.addf %65, %69 : vector<8x32xf32>
    %71 = math.tanh %70 : vector<8x32xf32>
    %72 = arith.subf %53, %71 : vector<8x32xf32>
    %73 = arith.mulf %64, %72 : vector<8x32xf32>
    %74 = arith.addf %71, %73 : vector<8x32xf32>
    %c0_11 = arith.constant 0 : index
    %c0_12 = arith.constant 0 : index
    %c0_13 = arith.constant 0 : index
    %75 = vector.load %arg10[%c0_11, %c0_12, %c0_13] : memref<8x8x32xf32, #tpu.memory_space<vmem>>, vector<8x1x32xf32>
    %76 = vector.shape_cast %75 : vector<8x1x32xf32> to vector<8x32xf32>
    %77 = vector.shape_cast %74 : vector<8x32xf32> to vector<8x1x32xf32>
    tpu.vector_store %arg10[%c0_11, %c0_12, %c0_13], %77 {strides = array<i32>} : memref<8x8x32xf32, #tpu.memory_space<vmem>>, vector<8x1x32xf32>,
    %cst_14 = arith.constant dense<0.000000e+00> : vector<8x96xf32>
    %78 = tpu.matmul %74, %1, %cst_14 {dimension_numbers = #tpu.dot_dimension_numbers<[1], [0], [0], [1], [0, 0, 1, 1], [], []>} : vector<8x32xf32>, vector<32x96xf32>, vector<8x96xf32> -> vector<8x96xf32>
    %79 = vector.extract_strided_slice %16 {offsets = [0, 0], sizes = [8, 64], strides = [1, 1]} : vector<8x96xf32> to vector<8x64xf32>
    %80 = vector.extract_strided_slice %78 {offsets = [0, 0], sizes = [8, 64], strides = [1, 1]} : vector<8x96xf32> to vector<8x64xf32>
    %81 = arith.addf %79, %80 : vector<8x64xf32>
    %82 = arith.negf %81 : vector<8x64xf32>
    %83 = math.exp %82 : vector<8x64xf32>
    %cst_15 = arith.constant 1.000000e+00 : f32
    %84 = vector.broadcast %cst_15 : f32 to vector<8x64xf32>
    %85 = arith.addf %84, %83 : vector<8x64xf32>
    %86 = arith.divf %84, %85 : vector<8x64xf32>
    %87 = vector.extract_strided_slice %86 {offsets = [0, 0], sizes = [8, 32], strides = [1, 1]} : vector<8x64xf32> to vector<8x32xf32>
    %88 = vector.extract_strided_slice %86 {offsets = [0, 32], sizes = [8, 32], strides = [1, 1]} : vector<8x64xf32> to vector<8x32xf32>
    %89 = vector.extract_strided_slice %16 {offsets = [0, 64], sizes = [8, 32], strides = [1, 1]} : vector<8x96xf32> to vector<8x32xf32>
    %90 = vector.extract_strided_slice %78 {offsets = [0, 64], sizes = [8, 32], strides = [1, 1]} : vector<8x96xf32> to vector<8x32xf32>
    %91 = vector.broadcast %3 : vector<1x32xf32> to vector<8x32xf32>
    %92 = arith.addf %90, %91 : vector<8x32xf32>
    %93 = arith.mulf %87, %92 : vector<8x32xf32>
    %94 = arith.addf %89, %93 : vector<8x32xf32>
    %95 = math.tanh %94 : vector<8x32xf32>
    %96 = arith.subf %74, %95 : vector<8x32xf32>
    %97 = arith.mulf %88, %96 : vector<8x32xf32>
    %98 = arith.addf %95, %97 : vector<8x32xf32>
    %c0_16 = arith.constant 0 : index
    %c1 = arith.constant 1 : index
    %c0_17 = arith.constant 0 : index
    %99 = vector.load %arg10[%c0_16, %c1, %c0_17] : memref<8x8x32xf32, #tpu.memory_space<vmem>>, vector<8x1x32xf32>
    %100 = vector.shape_cast %99 : vector<8x1x32xf32> to vector<8x32xf32>
    %101 = vector.shape_cast %98 : vector<8x32xf32> to vector<8x1x32xf32>
    tpu.vector_store %arg10[%c0_16, %c1, %c0_17], %101 {strides = array<i32>} : memref<8x8x32xf32, #tpu.memory_space<vmem>>, vector<8x1x32xf32>,
    %cst_18 = arith.constant dense<0.000000e+00> : vector<8x96xf32>
    %102 = tpu.matmul %98, %1, %cst_18 {dimension_numbers = #tpu.dot_dimension_numbers<[1], [0], [0], [1], [0, 0, 1, 1], [], []>} : vector<8x32xf32>, vector<32x96xf32>, vector<8x96xf32> -> vector<8x96xf32>
    %103 = vector.extract_strided_slice %22 {offsets = [0, 0], sizes = [8, 64], strides = [1, 1]} : vector<8x96xf32> to vector<8x64xf32>
    %104 = vector.extract_strided_slice %102 {offsets = [0, 0], sizes = [8, 64], strides = [1, 1]} : vector<8x96xf32> to vector<8x64xf32>
    %105 = arith.addf %103, %104 : vector<8x64xf32>
    %106 = arith.negf %105 : vector<8x64xf32>
    %107 = math.exp %106 : vector<8x64xf32>
    %cst_19 = arith.constant 1.000000e+00 : f32
    %108 = vector.broadcast %cst_19 : f32 to vector<8x64xf32>
    %109 = arith.addf %108, %107 : vector<8x64xf32>
    %110 = arith.divf %108, %109 : vector<8x64xf32>
    %111 = vector.extract_strided_slice %110 {offsets = [0, 0], sizes = [8, 32], strides = [1, 1]} : vector<8x64xf32> to vector<8x32xf32>
    %112 = vector.extract_strided_slice %110 {offsets = [0, 32], sizes = [8, 32], strides = [1, 1]} : vector<8x64xf32> to vector<8x32xf32>
    %113 = vector.extract_strided_slice %22 {offsets = [0, 64], sizes = [8, 32], strides = [1, 1]} : vector<8x96xf32> to vector<8x32xf32>
    %114 = vector.extract_strided_slice %102 {offsets = [0, 64], sizes = [8, 32], strides = [1, 1]} : vector<8x96xf32> to vector<8x32xf32>
    %115 = vector.broadcast %3 : vector<1x32xf32> to vector<8x32xf32>
    %116 = arith.addf %114, %115 : vector<8x32xf32>
    %117 = arith.mulf %111, %116 : vector<8x32xf32>
    %118 = arith.addf %113, %117 : vector<8x32xf32>
    %119 = math.tanh %118 : vector<8x32xf32>
    %120 = arith.subf %98, %119 : vector<8x32xf32>
    %121 = arith.mulf %112, %120 : vector<8x32xf32>
    %122 = arith.addf %119, %121 : vector<8x32xf32>
    %c0_20 = arith.constant 0 : index
    %c2 = arith.constant 2 : index
    %c0_21 = arith.constant 0 : index
    %123 = vector.load %arg10[%c0_20, %c2, %c0_21] : memref<8x8x32xf32, #tpu.memory_space<vmem>>, vector<8x1x32xf32>
    %124 = vector.shape_cast %123 : vector<8x1x32xf32> to vector<8x32xf32>
    %125 = vector.shape_cast %122 : vector<8x32xf32> to vector<8x1x32xf32>
    tpu.vector_store %arg10[%c0_20, %c2, %c0_21], %125 {strides = array<i32>} : memref<8x8x32xf32, #tpu.memory_space<vmem>>, vector<8x1x32xf32>,
    %cst_22 = arith.constant dense<0.000000e+00> : vector<8x96xf32>
    %126 = tpu.matmul %122, %1, %cst_22 {dimension_numbers = #tpu.dot_dimension_numbers<[1], [0], [0], [1], [0, 0, 1, 1], [], []>} : vector<8x32xf32>, vector<32x96xf32>, vector<8x96xf32> -> vector<8x96xf32>
    %127 = vector.extract_strided_slice %28 {offsets = [0, 0], sizes = [8, 64], strides = [1, 1]} : vector<8x96xf32> to vector<8x64xf32>
    %128 = vector.extract_strided_slice %126 {offsets = [0, 0], sizes = [8, 64], strides = [1, 1]} : vector<8x96xf32> to vector<8x64xf32>
    %129 = arith.addf %127, %128 : vector<8x64xf32>
    %130 = arith.negf %129 : vector<8x64xf32>
    %131 = math.exp %130 : vector<8x64xf32>
    %cst_23 = arith.constant 1.000000e+00 : f32
    %132 = vector.broadcast %cst_23 : f32 to vector<8x64xf32>
    %133 = arith.addf %132, %131 : vector<8x64xf32>
    %134 = arith.divf %132, %133 : vector<8x64xf32>
    %135 = vector.extract_strided_slice %134 {offsets = [0, 0], sizes = [8, 32], strides = [1, 1]} : vector<8x64xf32> to vector<8x32xf32>
    %136 = vector.extract_strided_slice %134 {offsets = [0, 32], sizes = [8, 32], strides = [1, 1]} : vector<8x64xf32> to vector<8x32xf32>
    %137 = vector.extract_strided_slice %28 {offsets = [0, 64], sizes = [8, 32], strides = [1, 1]} : vector<8x96xf32> to vector<8x32xf32>
    %138 = vector.extract_strided_slice %126 {offsets = [0, 64], sizes = [8, 32], strides = [1, 1]} : vector<8x96xf32> to vector<8x32xf32>
    %139 = vector.broadcast %3 : vector<1x32xf32> to vector<8x32xf32>
    %140 = arith.addf %138, %139 : vector<8x32xf32>
    %141 = arith.mulf %135, %140 : vector<8x32xf32>
    %142 = arith.addf %137, %141 : vector<8x32xf32>
    %143 = math.tanh %142 : vector<8x32xf32>
    %144 = arith.subf %122, %143 : vector<8x32xf32>
    %145 = arith.mulf %136, %144 : vector<8x32xf32>
    %146 = arith.addf %143, %145 : vector<8x32xf32>
    %c0_24 = arith.constant 0 : index
    %c3 = arith.constant 3 : index
    %c0_25 = arith.constant 0 : index
    %147 = vector.load %arg10[%c0_24, %c3, %c0_25] : memref<8x8x32xf32, #tpu.memory_space<vmem>>, vector<8x1x32xf32>
    %148 = vector.shape_cast %147 : vector<8x1x32xf32> to vector<8x32xf32>
    %149 = vector.shape_cast %146 : vector<8x32xf32> to vector<8x1x32xf32>
    tpu.vector_store %arg10[%c0_24, %c3, %c0_25], %149 {strides = array<i32>} : memref<8x8x32xf32, #tpu.memory_space<vmem>>, vector<8x1x32xf32>,
    %cst_26 = arith.constant dense<0.000000e+00> : vector<8x96xf32>
    %150 = tpu.matmul %146, %1, %cst_26 {dimension_numbers = #tpu.dot_dimension_numbers<[1], [0], [0], [1], [0, 0, 1, 1], [], []>} : vector<8x32xf32>, vector<32x96xf32>, vector<8x96xf32> -> vector<8x96xf32>
    %151 = vector.extract_strided_slice %34 {offsets = [0, 0], sizes = [8, 64], strides = [1, 1]} : vector<8x96xf32> to vector<8x64xf32>
    %152 = vector.extract_strided_slice %150 {offsets = [0, 0], sizes = [8, 64], strides = [1, 1]} : vector<8x96xf32> to vector<8x64xf32>
    %153 = arith.addf %151, %152 : vector<8x64xf32>
    %154 = arith.negf %153 : vector<8x64xf32>
    %155 = math.exp %154 : vector<8x64xf32>
    %cst_27 = arith.constant 1.000000e+00 : f32
    %156 = vector.broadcast %cst_27 : f32 to vector<8x64xf32>
    %157 = arith.addf %156, %155 : vector<8x64xf32>
    %158 = arith.divf %156, %157 : vector<8x64xf32>
    %159 = vector.extract_strided_slice %158 {offsets = [0, 0], sizes = [8, 32], strides = [1, 1]} : vector<8x64xf32> to vector<8x32xf32>
    %160 = vector.extract_strided_slice %158 {offsets = [0, 32], sizes = [8, 32], strides = [1, 1]} : vector<8x64xf32> to vector<8x32xf32>
    %161 = vector.extract_strided_slice %34 {offsets = [0, 64], sizes = [8, 32], strides = [1, 1]} : vector<8x96xf32> to vector<8x32xf32>
    %162 = vector.extract_strided_slice %150 {offsets = [0, 64], sizes = [8, 32], strides = [1, 1]} : vector<8x96xf32> to vector<8x32xf32>
    %163 = vector.broadcast %3 : vector<1x32xf32> to vector<8x32xf32>
    %164 = arith.addf %162, %163 : vector<8x32xf32>
    %165 = arith.mulf %159, %164 : vector<8x32xf32>
    %166 = arith.addf %161, %165 : vector<8x32xf32>
    %167 = math.tanh %166 : vector<8x32xf32>
    %168 = arith.subf %146, %167 : vector<8x32xf32>
    %169 = arith.mulf %160, %168 : vector<8x32xf32>
    %170 = arith.addf %167, %169 : vector<8x32xf32>
    %c0_28 = arith.constant 0 : index
    %c4 = arith.constant 4 : index
    %c0_29 = arith.constant 0 : index
    %171 = vector.load %arg10[%c0_28, %c4, %c0_29] : memref<8x8x32xf32, #tpu.memory_space<vmem>>, vector<8x1x32xf32>
    %172 = vector.shape_cast %171 : vector<8x1x32xf32> to vector<8x32xf32>
    %173 = vector.shape_cast %170 : vector<8x32xf32> to vector<8x1x32xf32>
    tpu.vector_store %arg10[%c0_28, %c4, %c0_29], %173 {strides = array<i32>} : memref<8x8x32xf32, #tpu.memory_space<vmem>>, vector<8x1x32xf32>,
    %cst_30 = arith.constant dense<0.000000e+00> : vector<8x96xf32>
    %174 = tpu.matmul %170, %1, %cst_30 {dimension_numbers = #tpu.dot_dimension_numbers<[1], [0], [0], [1], [0, 0, 1, 1], [], []>} : vector<8x32xf32>, vector<32x96xf32>, vector<8x96xf32> -> vector<8x96xf32>
    %175 = vector.extract_strided_slice %40 {offsets = [0, 0], sizes = [8, 64], strides = [1, 1]} : vector<8x96xf32> to vector<8x64xf32>
    %176 = vector.extract_strided_slice %174 {offsets = [0, 0], sizes = [8, 64], strides = [1, 1]} : vector<8x96xf32> to vector<8x64xf32>
    %177 = arith.addf %175, %176 : vector<8x64xf32>
    %178 = arith.negf %177 : vector<8x64xf32>
    %179 = math.exp %178 : vector<8x64xf32>
    %cst_31 = arith.constant 1.000000e+00 : f32
    %180 = vector.broadcast %cst_31 : f32 to vector<8x64xf32>
    %181 = arith.addf %180, %179 : vector<8x64xf32>
    %182 = arith.divf %180, %181 : vector<8x64xf32>
    %183 = vector.extract_strided_slice %182 {offsets = [0, 0], sizes = [8, 32], strides = [1, 1]} : vector<8x64xf32> to vector<8x32xf32>
    %184 = vector.extract_strided_slice %182 {offsets = [0, 32], sizes = [8, 32], strides = [1, 1]} : vector<8x64xf32> to vector<8x32xf32>
    %185 = vector.extract_strided_slice %40 {offsets = [0, 64], sizes = [8, 32], strides = [1, 1]} : vector<8x96xf32> to vector<8x32xf32>
    %186 = vector.extract_strided_slice %174 {offsets = [0, 64], sizes = [8, 32], strides = [1, 1]} : vector<8x96xf32> to vector<8x32xf32>
    %187 = vector.broadcast %3 : vector<1x32xf32> to vector<8x32xf32>
    %188 = arith.addf %186, %187 : vector<8x32xf32>
    %189 = arith.mulf %183, %188 : vector<8x32xf32>
    %190 = arith.addf %185, %189 : vector<8x32xf32>
    %191 = math.tanh %190 : vector<8x32xf32>
    %192 = arith.subf %170, %191 : vector<8x32xf32>
    %193 = arith.mulf %184, %192 : vector<8x32xf32>
    %194 = arith.addf %191, %193 : vector<8x32xf32>
    %c0_32 = arith.constant 0 : index
    %c5 = arith.constant 5 : index
    %c0_33 = arith.constant 0 : index
    %195 = vector.load %arg10[%c0_32, %c5, %c0_33] : memref<8x8x32xf32, #tpu.memory_space<vmem>>, vector<8x1x32xf32>
    %196 = vector.shape_cast %195 : vector<8x1x32xf32> to vector<8x32xf32>
    %197 = vector.shape_cast %194 : vector<8x32xf32> to vector<8x1x32xf32>
    tpu.vector_store %arg10[%c0_32, %c5, %c0_33], %197 {strides = array<i32>} : memref<8x8x32xf32, #tpu.memory_space<vmem>>, vector<8x1x32xf32>,
    %cst_34 = arith.constant dense<0.000000e+00> : vector<8x96xf32>
    %198 = tpu.matmul %194, %1, %cst_34 {dimension_numbers = #tpu.dot_dimension_numbers<[1], [0], [0], [1], [0, 0, 1, 1], [], []>} : vector<8x32xf32>, vector<32x96xf32>, vector<8x96xf32> -> vector<8x96xf32>
    %199 = vector.extract_strided_slice %46 {offsets = [0, 0], sizes = [8, 64], strides = [1, 1]} : vector<8x96xf32> to vector<8x64xf32>
    %200 = vector.extract_strided_slice %198 {offsets = [0, 0], sizes = [8, 64], strides = [1, 1]} : vector<8x96xf32> to vector<8x64xf32>
    %201 = arith.addf %199, %200 : vector<8x64xf32>
    %202 = arith.negf %201 : vector<8x64xf32>
    %203 = math.exp %202 : vector<8x64xf32>
    %cst_35 = arith.constant 1.000000e+00 : f32
    %204 = vector.broadcast %cst_35 : f32 to vector<8x64xf32>
    %205 = arith.addf %204, %203 : vector<8x64xf32>
    %206 = arith.divf %204, %205 : vector<8x64xf32>
    %207 = vector.extract_strided_slice %206 {offsets = [0, 0], sizes = [8, 32], strides = [1, 1]} : vector<8x64xf32> to vector<8x32xf32>
    %208 = vector.extract_strided_slice %206 {offsets = [0, 32], sizes = [8, 32], strides = [1, 1]} : vector<8x64xf32> to vector<8x32xf32>
    %209 = vector.extract_strided_slice %46 {offsets = [0, 64], sizes = [8, 32], strides = [1, 1]} : vector<8x96xf32> to vector<8x32xf32>
    %210 = vector.extract_strided_slice %198 {offsets = [0, 64], sizes = [8, 32], strides = [1, 1]} : vector<8x96xf32> to vector<8x32xf32>
    %211 = vector.broadcast %3 : vector<1x32xf32> to vector<8x32xf32>
    %212 = arith.addf %210, %211 : vector<8x32xf32>
    %213 = arith.mulf %207, %212 : vector<8x32xf32>
    %214 = arith.addf %209, %213 : vector<8x32xf32>
    %215 = math.tanh %214 : vector<8x32xf32>
    %216 = arith.subf %194, %215 : vector<8x32xf32>
    %217 = arith.mulf %208, %216 : vector<8x32xf32>
    %218 = arith.addf %215, %217 : vector<8x32xf32>
    %c0_36 = arith.constant 0 : index
    %c6 = arith.constant 6 : index
    %c0_37 = arith.constant 0 : index
    %219 = vector.load %arg10[%c0_36, %c6, %c0_37] : memref<8x8x32xf32, #tpu.memory_space<vmem>>, vector<8x1x32xf32>
    %220 = vector.shape_cast %219 : vector<8x1x32xf32> to vector<8x32xf32>
    %221 = vector.shape_cast %218 : vector<8x32xf32> to vector<8x1x32xf32>
    tpu.vector_store %arg10[%c0_36, %c6, %c0_37], %221 {strides = array<i32>} : memref<8x8x32xf32, #tpu.memory_space<vmem>>, vector<8x1x32xf32>,
    %cst_38 = arith.constant dense<0.000000e+00> : vector<8x96xf32>
    %222 = tpu.matmul %218, %1, %cst_38 {dimension_numbers = #tpu.dot_dimension_numbers<[1], [0], [0], [1], [0, 0, 1, 1], [], []>} : vector<8x32xf32>, vector<32x96xf32>, vector<8x96xf32> -> vector<8x96xf32>
    %223 = vector.extract_strided_slice %52 {offsets = [0, 0], sizes = [8, 64], strides = [1, 1]} : vector<8x96xf32> to vector<8x64xf32>
    %224 = vector.extract_strided_slice %222 {offsets = [0, 0], sizes = [8, 64], strides = [1, 1]} : vector<8x96xf32> to vector<8x64xf32>
    %225 = arith.addf %223, %224 : vector<8x64xf32>
    %226 = arith.negf %225 : vector<8x64xf32>
    %227 = math.exp %226 : vector<8x64xf32>
    %cst_39 = arith.constant 1.000000e+00 : f32
    %228 = vector.broadcast %cst_39 : f32 to vector<8x64xf32>
    %229 = arith.addf %228, %227 : vector<8x64xf32>
    %230 = arith.divf %228, %229 : vector<8x64xf32>
    %231 = vector.extract_strided_slice %230 {offsets = [0, 0], sizes = [8, 32], strides = [1, 1]} : vector<8x64xf32> to vector<8x32xf32>
    %232 = vector.extract_strided_slice %230 {offsets = [0, 32], sizes = [8, 32], strides = [1, 1]} : vector<8x64xf32> to vector<8x32xf32>
    %233 = vector.extract_strided_slice %52 {offsets = [0, 64], sizes = [8, 32], strides = [1, 1]} : vector<8x96xf32> to vector<8x32xf32>
    %234 = vector.extract_strided_slice %222 {offsets = [0, 64], sizes = [8, 32], strides = [1, 1]} : vector<8x96xf32> to vector<8x32xf32>
    %235 = vector.broadcast %3 : vector<1x32xf32> to vector<8x32xf32>
    %236 = arith.addf %234, %235 : vector<8x32xf32>
    %237 = arith.mulf %231, %236 : vector<8x32xf32>
    %238 = arith.addf %233, %237 : vector<8x32xf32>
    %239 = math.tanh %238 : vector<8x32xf32>
    %240 = arith.subf %218, %239 : vector<8x32xf32>
    %241 = arith.mulf %232, %240 : vector<8x32xf32>
    %242 = arith.addf %239, %241 : vector<8x32xf32>
    %c0_40 = arith.constant 0 : index
    %c7 = arith.constant 7 : index
    %c0_41 = arith.constant 0 : index
    %243 = vector.load %arg10[%c0_40, %c7, %c0_41] : memref<8x8x32xf32, #tpu.memory_space<vmem>>, vector<8x1x32xf32>
    %244 = vector.shape_cast %243 : vector<8x1x32xf32> to vector<8x32xf32>
    %245 = vector.shape_cast %242 : vector<8x32xf32> to vector<8x1x32xf32>
    tpu.vector_store %arg10[%c0_40, %c7, %c0_41], %245 {strides = array<i32>} : memref<8x8x32xf32, #tpu.memory_space<vmem>>, vector<8x1x32xf32>,
    %c0_42 = arith.constant 0 : index
    %c0_43 = arith.constant 0 : index
    %246 = vector.load %arg12[%c0_42, %c0_43] : memref<8x32xf32, #tpu.memory_space<vmem>>, vector<8x32xf32>
    tpu.vector_store %arg12[%c0_42, %c0_43], %242 {strides = array<i32>} : memref<8x32xf32, #tpu.memory_space<vmem>>, vector<8x32xf32>,
    %c0_44 = arith.constant 0 : index
    %c0_45 = arith.constant 0 : index
    %247 = vector.load %arg6[%c0_44, %c0_45] : memref<32x32xf32, #tpu.memory_space<vmem>>, vector<32x32xf32>
    %cst_46 = arith.constant dense<0.000000e+00> : vector<8x32xf32>
    %248 = tpu.matmul %242, %247, %cst_46 {dimension_numbers = #tpu.dot_dimension_numbers<[1], [0], [0], [1], [0, 0, 1, 1], [], []>} : vector<8x32xf32>, vector<32x32xf32>, vector<8x32xf32> -> vector<8x32xf32>
    %c0_47 = arith.constant 0 : index
    %c0_48 = arith.constant 0 : index
    %249 = vector.load %arg7[%c0_47, %c0_48] : memref<1x32xf32, #tpu.memory_space<vmem>>, vector<1x32xf32>
    %250 = vector.broadcast %249 : vector<1x32xf32> to vector<8x32xf32>
    %251 = arith.addf %248, %250 : vector<8x32xf32>
    %cst_49 = arith.constant 0.000000e+00 : f32
    %252 = vector.broadcast %cst_49 : f32 to vector<8x32xf32>
    %253 = arith.maximumf %251, %252 : vector<8x32xf32>
    %c0_50 = arith.constant 0 : index
    %c0_51 = arith.constant 0 : index
    %254 = vector.load %arg8[%c0_50, %c0_51] : memref<32x4xf32, #tpu.memory_space<vmem>>, vector<32x4xf32>
    %cst_52 = arith.constant dense<0.000000e+00> : vector<8x4xf32>
    %255 = tpu.matmul %253, %254, %cst_52 {dimension_numbers = #tpu.dot_dimension_numbers<[1], [0], [0], [1], [0, 0, 1, 1], [], []>} : vector<8x32xf32>, vector<32x4xf32>, vector<8x4xf32> -> vector<8x4xf32>
    %c0_53 = arith.constant 0 : index
    %c0_54 = arith.constant 0 : index
    %256 = vector.load %arg9[%c0_53, %c0_54] : memref<1x4xf32, #tpu.memory_space<vmem>>, vector<1x4xf32>
    %257 = vector.broadcast %256 : vector<1x4xf32> to vector<8x4xf32>
    %258 = arith.addf %255, %257 : vector<8x4xf32>
    %cst_55 = arith.constant 0.000000e+00 : f32
    %259 = vector.broadcast %cst_55 : f32 to vector<8x4xf32>
    %260 = arith.maximumf %258, %259 : vector<8x4xf32>
    %cst_56 = arith.constant dense<0xFF800000> : vector<8xf32>
    %261 = vector.multi_reduction <maximumf>, %260, %cst_56 [1] : vector<8x4xf32> to vector<8xf32>
    %262 = vector.shape_cast %261 : vector<8xf32> to vector<8x1xf32>
    %263 = vector.broadcast %262 : vector<8x1xf32> to vector<8x4xf32>
    %264 = arith.subf %260, %263 : vector<8x4xf32>
    %265 = math.exp %264 : vector<8x4xf32>
    %cst_57 = arith.constant dense<0.000000e+00> : vector<8xf32>
    %266 = vector.multi_reduction <add>, %265, %cst_57 [1] : vector<8x4xf32> to vector<8xf32>
    %267 = vector.shape_cast %266 : vector<8xf32> to vector<8x1xf32>
    %268 = math.log %267 : vector<8x1xf32>
    %269 = arith.addf %262, %268 : vector<8x1xf32>
    %270 = vector.broadcast %269 : vector<8x1xf32> to vector<8x4xf32>
    %271 = arith.subf %260, %270 : vector<8x4xf32>
    %c0_58 = arith.constant 0 : index
    %c0_59 = arith.constant 0 : index
    %272 = vector.load %arg11[%c0_58, %c0_59] : memref<8x4xf32, #tpu.memory_space<vmem>>, vector<8x4xf32>
    tpu.vector_store %arg11[%c0_58, %c0_59], %271 {strides = array<i32>} : memref<8x4xf32, #tpu.memory_space<vmem>>, vector<8x4xf32>,
    return
  }
  func.func @transform_0(%arg0: i32) -> (i32, i32) {
    %c0_i32 = arith.constant 0 : i32
    %c0_i32_0 = arith.constant 0 : i32
    return %arg0, %c0_i32 : i32, i32
  }
  func.func @transform_1(%arg0: i32) -> (i32, i32) {
    %c0_i32 = arith.constant 0 : i32
    %c0_i32_0 = arith.constant 0 : i32
    %c0_i32_1 = arith.constant 0 : i32
    return %c0_i32, %c0_i32_0 : i32, i32
  }
  func.func @transform_2(%arg0: i32) -> (i32, i32) {
    %c0_i32 = arith.constant 0 : i32
    %c0_i32_0 = arith.constant 0 : i32
    %c0_i32_1 = arith.constant 0 : i32
    return %c0_i32, %c0_i32_0 : i32, i32
  }
  func.func @transform_3(%arg0: i32) -> (i32, i32) {
    %c0_i32 = arith.constant 0 : i32
    %c0_i32_0 = arith.constant 0 : i32
    %c0_i32_1 = arith.constant 0 : i32
    return %c0_i32, %c0_i32_0 : i32, i32
  }
  func.func @transform_4(%arg0: i32) -> (i32, i32) {
    %c0_i32 = arith.constant 0 : i32
    %c0_i32_0 = arith.constant 0 : i32
    %c0_i32_1 = arith.constant 0 : i32
    return %c0_i32, %c0_i32_0 : i32, i32
  }
  func.func @transform_5(%arg0: i32) -> (i32, i32) {
    %c0_i32 = arith.constant 0 : i32
    %c0_i32_0 = arith.constant 0 : i32
    %c0_i32_1 = arith.constant 0 : i32
    return %c0_i32, %c0_i32_0 : i32, i32
  }
  func.func @transform_6(%arg0: i32) -> (i32, i32) {
    %c0_i32 = arith.constant 0 : i32
    %c0_i32_0 = arith.constant 0 : i32
    %c0_i32_1 = arith.constant 0 : i32
    return %c0_i32, %c0_i32_0 : i32, i32
  }
  func.func @transform_7(%arg0: i32) -> (i32, i32) {
    %c0_i32 = arith.constant 0 : i32
    %c0_i32_0 = arith.constant 0 : i32
    %c0_i32_1 = arith.constant 0 : i32
    return %c0_i32, %c0_i32_0 : i32, i32
  }
  func.func @transform_8(%arg0: i32) -> (i32, i32) {
    %c0_i32 = arith.constant 0 : i32
    %c0_i32_0 = arith.constant 0 : i32
    %c0_i32_1 = arith.constant 0 : i32
    return %c0_i32, %c0_i32_0 : i32, i32
  }
  func.func @transform_9(%arg0: i32) -> (i32, i32, i32) {
    %c0_i32 = arith.constant 0 : i32
    %c0_i32_0 = arith.constant 0 : i32
    %c0_i32_1 = arith.constant 0 : i32
    return %arg0, %c0_i32, %c0_i32_0 : i32, i32, i32
  }
  func.func @transform_10(%arg0: i32) -> (i32, i32) {
    %c0_i32 = arith.constant 0 : i32
    %c0_i32_0 = arith.constant 0 : i32
    return %arg0, %c0_i32 : i32, i32
  }
  func.func @transform_11(%arg0: i32) -> (i32, i32) {
    %c0_i32 = arith.constant 0 : i32
    %c0_i32_0 = arith.constant 0 : i32
    return %arg0, %c0_i32 : i32, i32
  }
}

</mosaic_0001>

<bundles_post_ra>
// kernel: analysis_gru_forward.1
= control target key start
LH: loop header
LB: loop body
LE: loop exit
PB: predicated region body
PF: predicated region fallthrough
CT: control target
= control target key end

     0   :  { %17 = vsyncpa [#allocation3], 0  ;;  %s3145_s0 = inlined_call_operand.vmem [shape: f32[8,8], index: 0, kind: input, shape index: {}]   ;;  %s3146_s1 = inlined_call_operand.vmem [shape: f32[1,96], index: 1, kind: input, shape index: {}]   ;;  %s3147_s2 = inlined_call_operand.vmem [shape: f32[32,96], index: 2, kind: input, shape index: {}]   ;;  %s3148_s3 = inlined_call_operand.vmem [shape: f32[1,96], index: 3, kind: input, shape index: {}]   ;;  %s3149_s4 = inlined_call_operand.vmem [shape: f32[1,32], index: 4, kind: input, shape index: {}]   ;;  %s3150_s5 = inlined_call_operand.hbm [shape: f32[32,32], index: 5, kind: input, shape index: {}]   ;;  %s3151_s6 = inlined_call_operand.vmem [shape: f32[1,32], index: 6, kind: input, shape index: {}]   ;;  %s3152_s7 = inlined_call_operand.vmem [shape: f32[32,4], index: 7, kind: input, shape index: {}]   ;;  %s3153_s8 = inlined_call_operand.vmem [shape: f32[1,4], index: 8, kind: input, shape index: {}]   ;;  %s3154_s9 = inlined_call_operand.hbm [shape: f32[8,8,32], index: 9, kind: output, shape index: {0}]   ;;  %s3155_s10 = inlined_call_operand.vmem [shape: f32[8,4], index: 10, kind: output, shape index: {1}]   ;;  %s3156_s11 = inlined_call_operand.hbm [shape: f32[8,32], index: 11, kind: output, shape index: {2}]  }
   0x1   :  { %18 = vsyncpa [#allocation4], 0 }
   0x2   :  { %19 = vsyncpa [#allocation7], 0  ;;  %s2424_s17 = smov [#allocation2]  }
   0x3   :  { %s35_s18 = sshll.u32 %s2424_s17, 4  ;;  %s36_s18 = int_to_ptr.vmem [resolvable:$true] %s35_s18 }
   0x4   :  { %s2366_s19 = scalar_lea.vmem %s36_s18, 512  ;;  %p2371_p1 = scmp.lt.s32.totalorder %s36_s18, %s36_s18 }
   0x5   :  { %p2367_p0 = scmp.ne.s32.totalorder %s36_s18, %s2366_s19  ;;  %p2372_p2 = scmp.lt.s32.totalorder %s2366_s19, %s2366_s19 }
   0x7   :  { %p2373_p3 = por %p2372_p2, %p2371_p1 }
   0x9   :  { %p2374_p4 = pnand %p2373_p3, %p2367_p0 }
   0xb   :  { %2377 = shalt.err (!%p2374_p4)
}
   0xc   :  { %s2425_s20 = smov 128   ;;  %s2426_s21 = smov 8  }
   0xd   :  { %41 = dma.hbm_to_vmem [thread:$0]  %s3150_s5, 512, %s36_s18, [#allocation3], %s2425_s20, %s2425_s20, %s2426_s21  }
   0xe   :  { %2418 = dma.done.wait [#allocation3], 512  }
   0xf   :  { %2419 = vsyncadd [#allocation3], 4294966784  ;;  %v2427_v0 = vmov 0.0   ;;  %vm2428_vm0 = vmmov 0   ;;  %v2429_v1 = vmov 0   ;;  %v2518_v2 = vld [vmem:[%s3147_s2 + $0x18] sm:$0xff] }
  0x10   :  { %2168 = vmatprep.subr.mxu0 %v2427_v0  ;;  %2176 = vmatprep.mubr.msk.f32.mxu0 %vm2428_vm0, %v2427_v0  ;;  %v2523_v3 = vld [vmem:[%s3147_s2 + $0x10] sm:$0xff]  ;;  %v2099_v4 = vld [vmem:[%s3149_s4] ss:$0 sm:$0xff]  ;;  %v2534_v5 = vld [vmem:[%s3147_s2 + $0x8] sm:$0xff]  ;;  %s2430_s12 = smov 64   ;;  %v2433_v30 = vmov 1  }
  0x11   :  { %2297 = vset.pattern.permute.xlu0 %v2429_v1  ;;  %2179 = vmatprep.subr.mxu1 %v2427_v0  ;;  %v2541_v6 = vld [vmem:[%s3145_s0] sm:$0xff]  ;;  %vm120_vm1 = vcmask 261120   ;;  %v2434_v53 = vmov 2   ;;  %vm338_vm2 = vcmask 253952   ;;  %vm2046_vm3 = vcmask 31744  }
  0x12   :  { %2187 = vmatprep.mubr.msk.f32.mxu1 %vm2428_vm0, %v2427_v0  ;;  %2169 = vmatpush3.msra.mxu0 %v2518_v2  ;;  %v2548_v7 = vld [vmem:[%s3147_s2] sm:$0xff] }
  0x13   :  { %2180 = vmatpush3.msra.mxu1 %v2518_v2  ;;  %2170 = vmatprep.subr.mxu0 %v2427_v0  ;;  %v2579_v13 = vld [vmem:[%s3146_s1] ss:$0 sm:$0xff]  ;;  %s2431_s1 = smov 96  }
  0x14   :  { %206 = vrot.lane.b32.xlu0 %v2099_v4, %s2430_s12  ;;  %2171 = vmatpush3.msra.mxu0 %v2523_v3  ;;  %v2585_v15 = vld [vmem:[%s3148_s3] ss:$0 sm:$0xff]  ;;  %s2432_s3 = smov 32  }
  0x15   :  { %2181 = vmatprep.subr.mxu1 %v2427_v0  ;;  %2172 = vmatprep.subr.mxu0 %v2427_v0 }
  0x16   :  { %2182 = vmatpush3.msra.mxu1 %v2523_v3  ;;  %2173 = vmatpush3.msra.mxu0 %v2534_v5 }
  0x17   :  { %2183 = vmatprep.subr.mxu1 %v2427_v0  ;;  %2174 = vmatprep.subr.mxu0 %v2427_v0 }
  0x18   :  { %61 = vperm.xlu0 %2297, %v2541_v6   ;;  %2175 = vmatpush3.msra.mxu0 %v2548_v7 }
  0x19   :  { %2184 = vmatpush3.msra.mxu1 %v2534_v5  ;;  %2177 = vmatmul.mubr.f32.vlgmr.msra.gmra.mxu0 %v2427_v0 }
  0x1a   :  { %2185 = vmatprep.subr.mxu1 %v2427_v0  ;;  %2190 = vmatprep.subr.mxu0 %v2427_v0 }
  0x1b   :  { %2186 = vmatpush3.msra.mxu1 %v2548_v7  ;;  %2191 = vmatpush3.msra.mxu0 %v2518_v2 }
  0x1c   :  { %2198 = vmatprep.mubr.msk.f32.mxu0 %vm2428_vm0, %v2427_v0  ;;  %2192 = vmatprep.subr.mxu0 %v2427_v0 }
  0x1d   :  { %2201 = vmatprep.subr.mxu1 %v2427_v0  ;;  %2193 = vmatpush3.msra.mxu0 %v2523_v3 }
  0x1e   :  { %2194 = vmatprep.subr.mxu0 %v2427_v0  ;;  %2298 = vset.pattern.permute.xlu0 %v2433_v30 }
  0x1f   :  { %2195 = vmatpush3.msra.mxu0 %v2534_v5  ;;  %2299 = vset.pattern.permute.xlu1 %v2434_v53 }
  0x20   :  { %2196 = vmatprep.subr.mxu0 %v2427_v0 }
  0x21   :  { %2197 = vmatpush3.msra.mxu0 %v2548_v7 }
  0x22   :  { %2212 = vmatprep.subr.mxu0 %v2427_v0 }
  0x86   :  { %v2572_v8 = vpop.permute.xlu0 %206 }
  0x93   :  { %v62_v12 = vpop.permute.xlu0 %61 }
  0x94   :  { %v70_v14 = vmul.f32 %v2579_v13, %v62_v12 }
  0x96   :  { %v77_v16 = vadd.f32 %v2585_v15, %v70_v14 }
  0xd9   :  { %v190_v9 = vpop.f32.mrf.mxu0 }
  0xda   :  { %v209_v10 = vadd.f32 %v2572_v8, %v190_v9  ;;  %v194_v17 = vadd.f32 %v190_v9, %v77_v16 }
  0xdb   :  { %v2178_v11 = vpop.f32.mrf.mxu0 }
  0xdc   :  { %211 = vrot.lane.b32.xlu1 %v209_v10, %s2430_s12  ;;  %v2098_v18 = vmul.f32 -1.442695, %v194_v17 }
  0xde   :  { %2306 = vpow2.f32 %v2098_v18 }
  0xeb   :  { %v2307_v19 = vpop.eup %2306 }
  0xec   :  { %v198_v20 = vadd.f32 1.0, %v2307_v19 }
  0xee   :  { %2308 = vrcp.f32 %v198_v20 }
  0xfb   :  { %v2309_v21 = vpop.eup %2308 }
 0x14e   :  { %v212_v22 = vpop.permute.xlu1 %211 }
 0x14f   :  { %v214_v23 = vmul.f32 %v2309_v21, %v212_v22 }
 0x151   :  { %216 = vrot.lane.b32.xlu1 %v214_v23, %s2430_s12 }
 0x1c3   :  { %v217_v24 = vpop.permute.xlu1 %216 }
 0x1c4   :  { %v219_v25 = vadd.f32 %v217_v24, %v77_v16 }
 0x1c6   :  { %2310 = vtanh.f32 %v219_v25 }
 0x1d3   :  { %v2311_v26 = vpop.eup %2310 }
 0x1d4   :  { %v221_v27 = vsub.f32 0.0, %v2311_v26 }
 0x1d6   :  { %223 = vrot.lane.b32.xlu1 %v221_v27, %s2431_s1 }
 0x248   :  { %v224_v28 = vpop.permute.xlu1 %223 }
 0x249   :  { %v226_v29 = vmul.f32 %v2309_v21, %v224_v28  ;;  %v2435_v21 = vmov 3  }
 0x24b   :  { %228 = vrot.lane.b32.xlu0 %v226_v29, %s2432_s3 }
 0x24f   :  { %79 = vperm.xlu0 %2298, %v2541_v6  }
 0x2bd   :  { %v229_v31 = vpop.permute.xlu0 %228 }
 0x2be   :  { %v2592_v32 = vadd.f32 %v2311_v26, %v229_v31 }
 0x2c0   :  { %347 = vrot.lane.b32.xlu1 %v2592_v32, %s2430_s12 }
 0x2ca   :  { %v80_v37 = vpop.permute.xlu0 %79 }
 0x2cb   :  { %v82_v38 = vmul.f32 %v2579_v13, %v80_v37 }
 0x2cd   :  { %v83_v39 = vadd.f32 %v2585_v15, %v82_v38 }
 0x332   :  { %v348_v33 = vpop.permute.xlu1 %347 }
 0x333   :  { %2188 = vmatmul.mubr.msk.f32.vlgmr.msra.gmra.mxu1 %vm120_vm1, %v348_v33 }
 0x334   :  { %2202 = vmatpush3.msra.mxu1 %v2518_v2  ;;  %2209 = vmatprep.mubr.msk.f32.mxu1 %vm2428_vm0, %v2427_v0 }
 0x335   :  { %2203 = vmatprep.subr.mxu1 %v2427_v0 }
 0x336   :  { %2204 = vmatpush3.msra.mxu1 %v2523_v3 }
 0x337   :  { %2205 = vmatprep.subr.mxu1 %v2427_v0 }
 0x338   :  { %2206 = vmatpush3.msra.mxu1 %v2534_v5 }
 0x339   :  { %2207 = vmatprep.subr.mxu1 %v2427_v0 }
 0x33a   :  { %2208 = vmatpush3.msra.mxu1 %v2548_v7 }
 0x33b   :  { %2223 = vmatprep.subr.mxu1 %v2427_v0 }
 0x3f3   :  { %v417_v34 = vpop.f32.mrf.mxu1 }
 0x3f4   :  { %v428_v35 = vadd.f32 %v417_v34, %v2572_v8  ;;  %v421_v40 = vadd.f32 %v417_v34, %v83_v39 }
 0x3f5   :  { %v2189_v36 = vpop.f32.mrf.mxu1 }
 0x3f6   :  { %430 = vrot.lane.b32.xlu1 %v428_v35, %s2430_s12  ;;  %v2101_v41 = vmul.f32 -1.442695, %v421_v40 }
 0x3f8   :  { %2312 = vpow2.f32 %v2101_v41 }
 0x405   :  { %v2313_v42 = vpop.eup %2312 }
 0x406   :  { %v425_v43 = vadd.f32 1.0, %v2313_v42 }
 0x408   :  { %2314 = vrcp.f32 %v425_v43 }
 0x415   :  { %v2315_v44 = vpop.eup %2314 }
 0x468   :  { %v431_v45 = vpop.permute.xlu1 %430 }
 0x469   :  { %v433_v46 = vmul.f32 %v2315_v44, %v431_v45  ;;  %v2436_v45 = vmov 4  }
 0x46b   :  { %435 = vrot.lane.b32.xlu1 %v433_v46, %s2430_s12 }
 0x4dd   :  { %v436_v47 = vpop.permute.xlu1 %435 }
 0x4de   :  { %v438_v48 = vadd.f32 %v436_v47, %v83_v39 }
 0x4e0   :  { %2316 = vtanh.f32 %v438_v48 }
 0x4ed   :  { %v2317_v49 = vpop.eup %2316 }
 0x4ee   :  { %v440_v50 = vsub.f32 %v2592_v32, %v2317_v49 }
 0x4f0   :  { %442 = vrot.lane.b32.xlu0 %v440_v50, %s2431_s1 }
 0x562   :  { %v443_v51 = vpop.permute.xlu0 %442 }
 0x563   :  { %v445_v52 = vmul.f32 %v2315_v44, %v443_v51 }
 0x565   :  { %447 = vrot.lane.b32.xlu1 %v445_v52, %s2432_s3 }
 0x569   :  { %85 = vperm.xlu1 %2299, %v2541_v6  }
 0x56d   :  { %2300 = vset.pattern.permute.xlu1 %v2435_v21 }
 0x5d7   :  { %v448_v54 = vpop.permute.xlu1 %447 }
 0x5d8   :  { %v2616_v55 = vadd.f32 %v2317_v49, %v448_v54 }
 0x5da   :  { %565 = vrot.lane.b32.xlu0 %v2616_v55, %s2430_s12 }
 0x5e4   :  { %v86_v60 = vpop.permute.xlu1 %85 }
 0x5e5   :  { %v88_v61 = vmul.f32 %v2579_v13, %v86_v60 }
 0x5e7   :  { %v89_v62 = vadd.f32 %v2585_v15, %v88_v61 }
 0x64c   :  { %v566_v56 = vpop.permute.xlu0 %565 }
 0x64d   :  { %2199 = vmatmul.mubr.msk.f32.vlgmr.msra.gmra.mxu0 %vm120_vm1, %v566_v56 }
 0x64e   :  { %2213 = vmatpush3.msra.mxu0 %v2518_v2  ;;  %2220 = vmatprep.mubr.msk.f32.mxu0 %vm2428_vm0, %v2427_v0 }
 0x64f   :  { %2214 = vmatprep.subr.mxu0 %v2427_v0 }
 0x650   :  { %2215 = vmatpush3.msra.mxu0 %v2523_v3 }
 0x651   :  { %2216 = vmatprep.subr.mxu0 %v2427_v0 }
 0x652   :  { %2217 = vmatpush3.msra.mxu0 %v2534_v5 }
 0x653   :  { %2218 = vmatprep.subr.mxu0 %v2427_v0 }
 0x654   :  { %2219 = vmatpush3.msra.mxu0 %v2548_v7 }
 0x655   :  { %2234 = vmatprep.subr.mxu0 %v2427_v0 }
 0x70d   :  { %v635_v57 = vpop.f32.mrf.mxu0 }
 0x70e   :  { %v646_v58 = vadd.f32 %v635_v57, %v2572_v8  ;;  %v639_v63 = vadd.f32 %v635_v57, %v89_v62 }
 0x70f   :  { %v2200_v59 = vpop.f32.mrf.mxu0 }
 0x710   :  { %648 = vrot.lane.b32.xlu0 %v646_v58, %s2430_s12  ;;  %v2103_v1 = vmul.f32 -1.442695, %v639_v63 }
 0x712   :  { %2318 = vpow2.f32 %v2103_v1 }
 0x71f   :  { %v2319_v4 = vpop.eup %2318 }
 0x720   :  { %v643_v9 = vadd.f32 1.0, %v2319_v4 }
 0x722   :  { %2320 = vrcp.f32 %v643_v9 }
 0x72f   :  { %v2321_v10 = vpop.eup %2320 }
 0x782   :  { %v649_v11 = vpop.permute.xlu0 %648 }
 0x783   :  { %v651_v12 = vmul.f32 %v2321_v10, %v649_v11 }
 0x785   :  { %653 = vrot.lane.b32.xlu1 %v651_v12, %s2430_s12  ;;  %v2437_v12 = vmov 5  }
 0x7f7   :  { %v654_v14 = vpop.permute.xlu1 %653 }
 0x7f8   :  { %v656_v16 = vadd.f32 %v654_v14, %v89_v62 }
 0x7fa   :  { %2322 = vtanh.f32 %v656_v16 }
 0x807   :  { %v2323_v17 = vpop.eup %2322 }
 0x808   :  { %v658_v18 = vsub.f32 %v2616_v55, %v2323_v17 }
 0x80a   :  { %660 = vrot.lane.b32.xlu0 %v658_v18, %s2431_s1 }
 0x87c   :  { %v661_v19 = vpop.permute.xlu0 %660 }
 0x87d   :  { %v663_v20 = vmul.f32 %v2321_v10, %v661_v19 }
 0x87f   :  { %665 = vrot.lane.b32.xlu1 %v663_v20, %s2432_s3 }
 0x883   :  { %91 = vperm.xlu1 %2300, %v2541_v6  }
 0x887   :  { %2301 = vset.pattern.permute.xlu1 %v2436_v45 }
 0x8f1   :  { %v666_v22 = vpop.permute.xlu1 %665 }
 0x8f2   :  { %v2640_v23 = vadd.f32 %v2323_v17, %v666_v22 }
 0x8f4   :  { %783 = vrot.lane.b32.xlu0 %v2640_v23, %s2430_s12 }
 0x8fe   :  { %v92_v28 = vpop.permute.xlu1 %91 }
 0x8ff   :  { %v94_v29 = vmul.f32 %v2579_v13, %v92_v28 }
 0x901   :  { %v95_v30 = vadd.f32 %v2585_v15, %v94_v29 }
 0x966   :  { %v784_v24 = vpop.permute.xlu0 %783 }
 0x967   :  { %2210 = vmatmul.mubr.msk.f32.vlgmr.msra.gmra.mxu1 %vm120_vm1, %v784_v24 }
 0x968   :  { %2224 = vmatpush3.msra.mxu1 %v2518_v2  ;;  %2231 = vmatprep.mubr.msk.f32.mxu1 %vm2428_vm0, %v2427_v0 }
 0x969   :  { %2225 = vmatprep.subr.mxu1 %v2427_v0 }
 0x96a   :  { %2226 = vmatpush3.msra.mxu1 %v2523_v3 }
 0x96b   :  { %2227 = vmatprep.subr.mxu1 %v2427_v0 }
 0x96c   :  { %2228 = vmatpush3.msra.mxu1 %v2534_v5 }
 0x96d   :  { %2229 = vmatprep.subr.mxu1 %v2427_v0 }
 0x96e   :  { %2230 = vmatpush3.msra.mxu1 %v2548_v7 }
 0x96f   :  { %2245 = vmatprep.subr.mxu1 %v2427_v0 }
 0xa27   :  { %v853_v25 = vpop.f32.mrf.mxu1 }
 0xa28   :  { %v864_v26 = vadd.f32 %v853_v25, %v2572_v8  ;;  %v857_v31 = vadd.f32 %v853_v25, %v95_v30 }
 0xa29   :  { %v2211_v27 = vpop.f32.mrf.mxu1 }
 0xa2a   :  { %866 = vrot.lane.b32.xlu0 %v864_v26, %s2430_s12  ;;  %v2105_v33 = vmul.f32 -1.442695, %v857_v31 }
 0xa2c   :  { %2324 = vpow2.f32 %v2105_v33 }
 0xa39   :  { %v2325_v34 = vpop.eup %2324 }
 0xa3a   :  { %v861_v35 = vadd.f32 1.0, %v2325_v34 }
 0xa3c   :  { %2326 = vrcp.f32 %v861_v35  ;;  %v2438_v35 = vmov 6  }
 0xa49   :  { %v2327_v36 = vpop.eup %2326 }
 0xa9c   :  { %v867_v37 = vpop.permute.xlu0 %866 }
 0xa9d   :  { %v869_v38 = vmul.f32 %v2327_v36, %v867_v37 }
 0xa9f   :  { %871 = vrot.lane.b32.xlu1 %v869_v38, %s2430_s12 }
 0xb11   :  { %v872_v39 = vpop.permute.xlu1 %871 }
 0xb12   :  { %v874_v40 = vadd.f32 %v872_v39, %v95_v30 }
 0xb14   :  { %2328 = vtanh.f32 %v874_v40 }
 0xb21   :  { %v2329_v41 = vpop.eup %2328 }
 0xb22   :  { %v876_v42 = vsub.f32 %v2640_v23, %v2329_v41 }
 0xb24   :  { %878 = vrot.lane.b32.xlu0 %v876_v42, %s2431_s1 }
 0xb96   :  { %v879_v43 = vpop.permute.xlu0 %878 }
 0xb97   :  { %v881_v44 = vmul.f32 %v2327_v36, %v879_v43 }
 0xb99   :  { %883 = vrot.lane.b32.xlu1 %v881_v44, %s2432_s3 }
 0xb9d   :  { %97 = vperm.xlu1 %2301, %v2541_v6  }
 0xba1   :  { %2302 = vset.pattern.permute.xlu1 %v2437_v12 }
 0xc0b   :  { %v884_v46 = vpop.permute.xlu1 %883 }
 0xc0c   :  { %v2664_v47 = vadd.f32 %v2329_v41, %v884_v46 }
 0xc0e   :  { %1001 = vrot.lane.b32.xlu0 %v2664_v47, %s2430_s12 }
 0xc18   :  { %v98_v52 = vpop.permute.xlu1 %97 }
 0xc19   :  { %v100_v53 = vmul.f32 %v2579_v13, %v98_v52 }
 0xc1b   :  { %v101_v54 = vadd.f32 %v2585_v15, %v100_v53 }
 0xc80   :  { %v1002_v48 = vpop.permute.xlu0 %1001 }
 0xc81   :  { %2221 = vmatmul.mubr.msk.f32.vlgmr.msra.gmra.mxu0 %vm120_vm1, %v1002_v48 }
 0xc82   :  { %2235 = vmatpush3.msra.mxu0 %v2518_v2  ;;  %2242 = vmatprep.mubr.msk.f32.mxu0 %vm2428_vm0, %v2427_v0 }
 0xc83   :  { %2236 = vmatprep.subr.mxu0 %v2427_v0 }
 0xc84   :  { %2237 = vmatpush3.msra.mxu0 %v2523_v3 }
 0xc85   :  { %2238 = vmatprep.subr.mxu0 %v2427_v0 }
 0xc86   :  { %2239 = vmatpush3.msra.mxu0 %v2534_v5 }
 0xc87   :  { %2240 = vmatprep.subr.mxu0 %v2427_v0 }
 0xc88   :  { %2241 = vmatpush3.msra.mxu0 %v2548_v7 }
 0xc89   :  { %2256 = vmatprep.subr.mxu0 %v2427_v0 }
 0xd41   :  { %v1071_v49 = vpop.f32.mrf.mxu0 }
 0xd42   :  { %v1082_v50 = vadd.f32 %v1071_v49, %v2572_v8  ;;  %v1075_v56 = vadd.f32 %v1071_v49, %v101_v54 }
 0xd43   :  { %v2222_v51 = vpop.f32.mrf.mxu0 }
 0xd44   :  { %1084 = vrot.lane.b32.xlu0 %v1082_v50, %s2430_s12  ;;  %v2107_v57 = vmul.f32 -1.442695, %v1075_v56 }
 0xd46   :  { %2330 = vpow2.f32 %v2107_v57 }
 0xd53   :  { %v2331_v58 = vpop.eup %2330 }
 0xd54   :  { %v1079_v59 = vadd.f32 1.0, %v2331_v58 }
 0xd56   :  { %2332 = vrcp.f32 %v1079_v59 }
 0xd63   :  { %v2333_v60 = vpop.eup %2332 }
 0xdb6   :  { %v1085_v61 = vpop.permute.xlu0 %1084 }
 0xdb7   :  { %v1087_v62 = vmul.f32 %v2333_v60, %v1085_v61 }
 0xdb9   :  { %1089 = vrot.lane.b32.xlu1 %v1087_v62, %s2430_s12 }
 0xe2b   :  { %v1090_v63 = vpop.permute.xlu1 %1089 }
 0xe2c   :  { %v1092_v1 = vadd.f32 %v1090_v63, %v101_v54 }
 0xe2e   :  { %2334 = vtanh.f32 %v1092_v1 }
 0xe3b   :  { %v2335_v4 = vpop.eup %2334 }
 0xe3c   :  { %v1094_v9 = vsub.f32 %v2664_v47, %v2335_v4 }
 0xe3e   :  { %1096 = vrot.lane.b32.xlu0 %v1094_v9, %s2431_s1 }
 0xeb0   :  { %v1097_v10 = vpop.permute.xlu0 %1096 }
 0xeb1   :  { %v1099_v11 = vmul.f32 %v2333_v60, %v1097_v10  ;;  %v2439_v60 = vmov 7  }
 0xeb2   :  { %2305 = vset.pattern.permute.xlu0 %v2439_v60 }
 0xeb3   :  { %1101 = vrot.lane.b32.xlu1 %v1099_v11, %s2432_s3 }
 0xeb7   :  { %103 = vperm.xlu1 %2302, %v2541_v6  }
 0xebb   :  { %2303 = vset.pattern.permute.xlu1 %v2438_v35 }
 0xf25   :  { %v1102_v14 = vpop.permute.xlu1 %1101 }
 0xf26   :  { %v2688_v16 = vadd.f32 %v2335_v4, %v1102_v14 }
 0xf28   :  { %1219 = vrot.lane.b32.xlu0 %v2688_v16, %s2430_s12 }
 0xf32   :  { %v104_v20 = vpop.permute.xlu1 %103 }
 0xf33   :  { %v106_v21 = vmul.f32 %v2579_v13, %v104_v20 }
 0xf9a   :  { %v1220_v17 = vpop.permute.xlu0 %1219 }
 0xf9b   :  { %2232 = vmatmul.mubr.msk.f32.vlgmr.msra.gmra.mxu1 %vm120_vm1, %v1220_v17 }
 0xf9c   :  { %2246 = vmatpush3.msra.mxu1 %v2518_v2  ;;  %2253 = vmatprep.mubr.msk.f32.mxu1 %vm2428_vm0, %v2427_v0 }
 0xf9d   :  { %2247 = vmatprep.subr.mxu1 %v2427_v0 }
 0xf9e   :  { %2248 = vmatpush3.msra.mxu1 %v2523_v3  ;;  %v107_v3 = vadd.f32 %v2585_v15, %v106_v21 }
 0xf9f   :  { %2249 = vmatprep.subr.mxu1 %v2427_v0 }
 0xfa0   :  { %2250 = vmatpush3.msra.mxu1 %v2534_v5 }
 0xfa1   :  { %2251 = vmatprep.subr.mxu1 %v2427_v0 }
 0xfa2   :  { %2252 = vmatpush3.msra.mxu1 %v2548_v7 }
 0xfa3   :  { %2267 = vmatprep.subr.mxu1 %v2427_v0 }
0x105b   :  { %v1289_v18 = vpop.f32.mrf.mxu1 }
0x105c   :  { %v1300_v2 = vadd.f32 %v1289_v18, %v2572_v8  ;;  %v1293_v22 = vadd.f32 %v1289_v18, %v107_v3 }
0x105d   :  { %v2233_v19 = vpop.f32.mrf.mxu1 }
0x105e   :  { %1302 = vrot.lane.b32.xlu0 %v1300_v2, %s2430_s12  ;;  %v2109_v24 = vmul.f32 -1.442695, %v1293_v22 }
0x1060   :  { %2336 = vpow2.f32 %v2109_v24  ;;  %v237_v24 = vlaneseq }
0x106d   :  { %v2337_v5 = vpop.eup %2336 }
0x106e   :  { %v1297_v25 = vadd.f32 1.0, %v2337_v5 }
0x1070   :  { %2338 = vrcp.f32 %v1297_v25  ;;  %v238_v25 = vshrl.u32 %v237_v24, 7 }
0x107d   :  { %v2339_v7 = vpop.eup %2338 }
0x10d0   :  { %v1303_v26 = vpop.permute.xlu0 %1302 }
0x10d1   :  { %v1305_v27 = vmul.f32 %v2339_v7, %v1303_v26  ;;  %v452_v26 = vcombine.high %v2616_v55, %v2616_v55 }
0x10d3   :  { %1307 = vrot.lane.b32.xlu1 %v1305_v27, %s2430_s12 }
0x1145   :  { %v1308_v28 = vpop.permute.xlu1 %1307 }
0x1146   :  { %v1310_v29 = vadd.f32 %v1308_v28, %v107_v3 }
0x1148   :  { %2340 = vtanh.f32 %v1310_v29 }
0x1155   :  { %v2341_v30 = vpop.eup %2340 }
0x1156   :  { %v1312_v31 = vsub.f32 %v2688_v16, %v2341_v30 }
0x1158   :  { %1314 = vrot.lane.b32.xlu0 %v1312_v31, %s2431_s1 }
0x11ca   :  { %v1315_v33 = vpop.permute.xlu0 %1314 }
0x11cb   :  { %v1317_v34 = vmul.f32 %v2339_v7, %v1315_v33 }
0x11cd   :  { %1319 = vrot.lane.b32.xlu1 %v1317_v34, %s2432_s3 }
0x11d1   :  { %109 = vperm.xlu1 %2303, %v2541_v6  }
0x11d5   :  { %2304 = vset.pattern.permute.xlu1 %v2439_v60 }
0x123f   :  { %v1320_v36 = vpop.permute.xlu1 %1319 }
0x1240   :  { %v2712_v37 = vadd.f32 %v2341_v30, %v1320_v36  ;;  %v2763_v36 = vsub.s32 0, %v238_v25 }
0x1242   :  { %1437 = vrot.lane.b32.xlu0 %v2712_v37, %s2430_s12 }
0x124c   :  { %v110_v42 = vpop.permute.xlu1 %109 }
0x124d   :  { %v112_v43 = vmul.f32 %v2579_v13, %v110_v42 }
0x124f   :  { %v113_v44 = vadd.f32 %v2585_v15, %v112_v43 }
0x12b4   :  { %v1438_v38 = vpop.permute.xlu0 %1437 }
0x12b5   :  { %2243 = vmatmul.mubr.msk.f32.vlgmr.msra.gmra.mxu0 %vm120_vm1, %v1438_v38 }
0x12b6   :  { %2264 = vmatprep.mubr.msk.f32.mxu0 %vm2428_vm0, %v2427_v0 }
0x1375   :  { %v1507_v39 = vpop.f32.mrf.mxu0 }
0x1376   :  { %v1518_v40 = vadd.f32 %v1507_v39, %v2572_v8  ;;  %v1511_v45 = vadd.f32 %v1507_v39, %v113_v44 }
0x1377   :  { %v2244_v41 = vpop.f32.mrf.mxu0 }
0x1378   :  { %1520 = vrot.lane.b32.xlu0 %v1518_v40, %s2430_s12  ;;  %v2111_v46 = vmul.f32 -1.442695, %v1511_v45 }
0x137a   :  { %2342 = vpow2.f32 %v2111_v46 }
0x1387   :  { %v2343_v48 = vpop.eup %2342 }
0x1388   :  { %v1515_v49 = vadd.f32 1.0, %v2343_v48 }
0x138a   :  { %2344 = vrcp.f32 %v1515_v49  ;;  %v670_v49 = vcombine.high %v2640_v23, %v2640_v23 }
0x1397   :  { %v2345_v50 = vpop.eup %2344 }
0x13ea   :  { %v1521_v51 = vpop.permute.xlu0 %1520 }
0x13eb   :  { %v1523_v52 = vmul.f32 %v2345_v50, %v1521_v51 }
0x13ed   :  { %1525 = vrot.lane.b32.xlu1 %v1523_v52, %s2430_s12 }
0x145f   :  { %v1526_v53 = vpop.permute.xlu1 %1525 }
0x1460   :  { %v1528_v54 = vadd.f32 %v1526_v53, %v113_v44 }
0x1462   :  { %2346 = vtanh.f32 %v1528_v54 }
0x146f   :  { %v2347_v56 = vpop.eup %2346 }
0x1470   :  { %v1530_v57 = vsub.f32 %v2712_v37, %v2347_v56 }
0x1472   :  { %1532 = vrot.lane.b32.xlu0 %v1530_v57, %s2431_s1 }
0x14e4   :  { %v1533_v58 = vpop.permute.xlu0 %1532 }
0x14e5   :  { %v1535_v59 = vmul.f32 %v2345_v50, %v1533_v58 }
0x14e7   :  { %1537 = vrot.lane.b32.xlu1 %v1535_v59, %s2432_s3 }
0x14eb   :  { %115 = vperm.xlu1 %2304, %v2541_v6  }
0x1559   :  { %v1538_v61 = vpop.permute.xlu1 %1537 }
0x155a   :  { %v2728_v62 = vadd.f32 %v2347_v56, %v1538_v61 }
0x155c   :  { %1655 = vrot.lane.b32.xlu0 %v2728_v62, %s2430_s12 }
0x1566   :  { %v116_v10 = vpop.permute.xlu1 %115 }
0x1567   :  { %v118_v6 = vmul.f32 %v2579_v13, %v116_v10  ;;  %v1877_v10 = vld [vmem:[#allocation2] sm:$0xff] }
0x1569   :  { %v119_v11 = vadd.f32 %v2585_v15, %v118_v6  ;;  %v2440_v15 = vmov 1966171168  }
0x156a   :  { %v235_v22 = vunpack.c.l.s4 %v2440_v15 }
0x156c   :  { %v236_v5 = vunpack.c.0.s8 %v235_v22 }
0x156e   :  { %v2745_v7 = vsub.s32 %v236_v5, %v238_v25 }
0x1570   :  { %v2751_v27 = vrot.slane %v2616_v55, %v2745_v7  ;;  %v466_v29 = vrot.slane %v452_v26, %v2745_v7  ;;  %v677_v42 = vrot.slane %v2640_v23, %v2745_v7  ;;  %v684_v54 = vrot.slane %v670_v49, %v2745_v7 }
0x1571   :  { %v240_v6 = vrot.slane %v2592_v32, %v2745_v7 }
0x1572   :  { %v467_v28 = vcombine.high %v2751_v27, %v2751_v27  ;;  %v2760_v34 = vrot.slane %v466_v29, %v2745_v7  ;;  %v468_v35 = vcombine.high %v466_v29, %v466_v29  ;;  %v693_v44 = vrot.slane %v677_v42, %v2745_v7 }
0x1573   :  { %v685_v45 = vcombine.high %v677_v42, %v677_v42  ;;  %v700_v57 = vrot.slane %v684_v54, %v2745_v7  ;;  %v686_v58 = vcombine.high %v684_v54, %v684_v54 }
0x1574   :  { %v2757_v33 = vrot.slane %v467_v28, %v2745_v7  ;;  %v498_v38 = vcombine.high %v2760_v34, %v2760_v34  ;;  %v2770_v39 = vrot.slane %v468_v35, %v2745_v7  ;;  %v722_v46 = vrot.slane %v693_v44, %v2763_v36 }
0x1575   :  { %v707_v48 = vrot.slane %v685_v45, %v2745_v7  ;;  %v715_v51 = vcombine.high %v693_v44, %v693_v44  ;;  %v738_v23 = vrot.slane %v700_v57, %v2763_v36  ;;  %v2797_v59 = vrot.slane %v686_v58, %v2745_v7 }
0x1576   :  { %v508_v55 = vrot.slane %v2757_v33, %v2763_v36  ;;  %v528_v40 = vrot.slane %v498_v38, %v2763_v36  ;;  %v500_v41 = vcombine.high %v2770_v39, %v2770_v39  ;;  %v716_v61 = vcombine.high %v700_v57, %v700_v57 }
0x1577   :  { %v726_v50 = vrot.slane %v707_v48, %v2763_v36  ;;  %v730_v52 = vrot.slane %v715_v51, %v2763_v36  ;;  %v717_v53 = vcombine.high %v707_v48, %v707_v48  ;;  %v742_v60 = vrot.slane %v2797_v59, %v2763_v36 }
0x1578   :  { %v532_v43 = vrot.slane %v500_v41, %v2763_v36  ;;  %v475_v44 = vrot.slane %v2751_v27, %v2745_v7  ;;  %v499_v51 = vcombine.high %v2757_v33, %v2757_v33  ;;  %v888_v27 = vcombine.high %v2664_v47, %v2664_v47 }
0x1579   :  { %v734_v56 = vrot.slane %v717_v53, %v2763_v36  ;;  %v520_v53 = vrot.slane %v2760_v34, %v2763_v36  ;;  %v524_v33 = vrot.slane %v2770_v39, %v2763_v36  ;;  %v2875_v58 = vrot.slane %v2688_v16, %v2745_v7 }
0x157a   :  { %v497_v48 = vcombine.high %v475_v44, %v475_v44  ;;  %v2863_v54 = vrot.slane %v888_v27, %v2745_v7  ;;  %v1106_v39 = vcombine.high %v2688_v16, %v2688_v16 }
0x157c   :  { %v904_v57 = vcombine.high %v2863_v54, %v2863_v54 }
0x15ce   :  { %v1656_v63 = vpop.permute.xlu0 %1655 }
0x15cf   :  { %2254 = vmatmul.mubr.msk.f32.vlgmr.msra.gmra.mxu1 %vm120_vm1, %v1656_v63  ;;  %v746_v63 = vrot.slane %v716_v61, %v2763_v36  ;;  %v1121_v61 = vcombine.high %v2875_v58, %v2875_v58 }
0x15d0   :  { %2275 = vmatprep.mubr.msk.f32.mxu1 %vm2428_vm0, %v2427_v0 }
0x168f   :  { %v1725_v1 = vpop.f32.mrf.mxu1 }
0x1690   :  { %v1736_v4 = vadd.f32 %v1725_v1, %v2572_v8  ;;  %v1729_v12 = vadd.f32 %v1725_v1, %v119_v11  ;;  %v1880_v1 = vld [vmem:[#allocation2 + $0x18] sm:$0xff] }
0x1691   :  { %v2255_v9 = vpop.f32.mrf.mxu1  ;;  %2257 = vmatpush3.msra.mxu0 %v1880_v1  ;;  %v1143_v1 = vrot.slane %v1121_v61, %v2745_v7 }
0x1692   :  { %1738 = vrot.lane.b32.xlu0 %v1736_v4, %s2430_s12  ;;  %v2113_v14 = vmul.f32 -1.442695, %v1729_v12  ;;  %2258 = vmatprep.subr.mxu0 %v2427_v0  ;;  %v1879_v4 = vld [vmem:[#allocation2 + $0x10] sm:$0xff]  ;;  %v1878_v9 = vld [vmem:[#allocation2 + $0x8] sm:$0xff] }
0x1693   :  { %2259 = vmatpush3.msra.mxu0 %v1879_v4  ;;  %v2889_v4 = vrot.slane %v1106_v39, %v2745_v7  ;;  %v1153_v16 = vcombine.high %v1143_v1, %v1143_v1 }
0x1694   :  { %2348 = vpow2.f32 %v2113_v14  ;;  %2260 = vmatprep.subr.mxu0 %v2427_v0  ;;  %v256_v14 = vrot.slane %v240_v6, %v2745_v7 }
0x1695   :  { %2261 = vmatpush3.msra.mxu0 %v1878_v9  ;;  %v1162_v9 = vrot.slane %v1143_v1, %v2763_v36 }
0x1696   :  { %2262 = vmatprep.subr.mxu0 %v2427_v0 }
0x1697   :  { %2263 = vmatpush3.msra.mxu0 %v1877_v10  ;;  %v1122_v10 = vcombine.high %v2889_v4, %v2889_v4 }
0x16a1   :  { %v2349_v17 = vpop.eup %2348 }
0x16a2   :  { %v1733_v18 = vadd.f32 1.0, %v2349_v17  ;;  %v248_v17 = vcombine.high %v240_v6, %v240_v6  ;;  %v2898_v6 = vrot.slane %v2712_v37, %v2745_v7 }
0x16a4   :  { %2350 = vrcp.f32 %v1733_v18 }
0x16b1   :  { %v2351_v2 = vpop.eup %2350 }
0x1704   :  { %v1739_v19 = vpop.permute.xlu0 %1738 }
0x1705   :  { %v1741_v20 = vmul.f32 %v2351_v2, %v1739_v19  ;;  %v270_v19 = vrot.slane %v248_v17, %v2745_v7  ;;  %v1324_v17 = vcombine.high %v2712_v37, %v2712_v37 }
0x1707   :  { %1743 = vrot.lane.b32.xlu1 %v1741_v20, %s2430_s12  ;;  %v280_v22 = vcombine.high %v270_v19, %v270_v19 }
0x1779   :  { %v1744_v8 = vpop.permute.xlu1 %1743 }
0x177a   :  { %v1746_v21 = vadd.f32 %v1744_v8, %v119_v11  ;;  %v233_v8 = vcombine.high %v2592_v32, %v2592_v32  ;;  %v297_v32 = vrot.slane %v280_v22, %v2763_v36 }
0x177c   :  { %2352 = vtanh.f32 %v1746_v21  ;;  %v289_v21 = vrot.slane %v270_v19, %v2763_v36  ;;  %v247_v24 = vrot.slane %v233_v8, %v2745_v7  ;;  %v1339_v19 = vcombine.high %v2898_v6, %v2898_v6 }
0x177e   :  { %v263_v25 = vrot.slane %v247_v24, %v2745_v7  ;;  %v249_v26 = vcombine.high %v247_v24, %v247_v24  ;;  %v1361_v8 = vrot.slane %v1339_v19, %v2745_v7 }
0x1780   :  { %v301_v29 = vrot.slane %v263_v25, %v2763_v36  ;;  %v1371_v37 = vcombine.high %v1361_v8, %v1361_v8 }
0x1782   :  { %v1388_v22 = vrot.slane %v1371_v37, %v2763_v36 }
0x1789   :  { %v2740_v3 = vpop.eup %2352 }
0x178a   :  { %v1748_v13 = vsub.f32 %v2728_v62, %v2740_v3 }
0x178c   :  { %1750 = vrot.lane.b32.xlu0 %v1748_v13, %s2431_s1 }
0x17fe   :  { %v1751_v30 = vpop.permute.xlu0 %1750 }
0x17ff   :  { %v1753_v31 = vmul.f32 %v2351_v2, %v1751_v30  ;;  %v285_v2 = vrot.slane %v256_v14, %v2763_v36  ;;  %v277_v30 = vrot.slane %v249_v26, %v2745_v7 }
0x1801   :  { %1755 = vrot.lane.b32.xlu1 %v1753_v31, %s2432_s3  ;;  %v305_v35 = vrot.slane %v277_v30, %v2763_v36  ;;  %v281_v41 = vcombine.high %v277_v30, %v277_v30 }
0x1805   :  { %535 = vrot.lane.b32.xlu1 %v508_v55, %s2430_s12  ;;  %v279_v55 = vcombine.high %v263_v25, %v263_v25 }
0x1809   :  { %545 = vrot.lane.b32.xlu1 %v528_v40, %s2430_s12  ;;  %v309_v40 = vrot.slane %v279_v55, %v2763_v36 }
0x180d   :  { %547 = vrot.lane.b32.xlu1 %v532_v43, %s2430_s12  ;;  %v313_v43 = vrot.slane %v281_v41, %v2763_v36 }
0x1811   :  { %751 = vrot.lane.b32.xlu1 %v722_v46, %s2430_s12  ;;  %v504_v46 = vrot.slane %v475_v44, %v2763_v36 }
0x1815   :  { %753 = vrot.lane.b32.xlu1 %v726_v50, %s2430_s12  ;;  %v512_v50 = vrot.slane %v497_v48, %v2763_v36 }
0x1819   :  { %755 = vrot.lane.b32.xlu1 %v730_v52, %s2430_s12  ;;  %v516_v52 = vrot.slane %v499_v51, %v2763_v36 }
0x181d   :  { %757 = vrot.lane.b32.xlu1 %v734_v56, %s2430_s12  ;;  %v718_v56 = vcombine.high %v2797_v59, %v2797_v59 }
0x181f   :  { %v750_v34 = vrot.slane %v718_v56, %v2763_v36 }
0x1821   :  { %759 = vrot.lane.b32.xlu1 %v738_v23, %s2430_s12  ;;  %v932_v23 = vrot.slane %v904_v57, %v2745_v7 }
0x1823   :  { %v960_v59 = vrot.slane %v932_v23, %v2763_v36 }
0x1825   :  { %761 = vrot.lane.b32.xlu1 %v742_v60, %s2430_s12  ;;  %v936_v60 = vcombine.high %v932_v23, %v932_v23 }
0x1829   :  { %763 = vrot.lane.b32.xlu1 %v746_v63, %s2430_s12  ;;  %v968_v63 = vrot.slane %v936_v60, %v2763_v36 }
0x1873   :  { %v1756_v11 = vpop.permute.xlu1 %1755 }
0x1874   :  { %v2811_v12 = vadd.f32 %v2740_v3, %v1756_v11  ;;  %v278_v3 = vcombine.high %v256_v14, %v256_v14  ;;  %v1170_v11 = vrot.slane %v1153_v16, %v2763_v36  ;;  %v1150_v14 = vrot.slane %v1122_v10, %v2745_v7 }
0x1876   :  { %1873 = vrot.lane.b32.xlu0 %v2811_v12, %s2430_s12  ;;  %v293_v15 = vrot.slane %v278_v3, %v2763_v36  ;;  %v1380_v3 = vrot.slane %v1361_v8, %v2763_v36  ;;  %v2944_v55 = vrot.slane %v2811_v12, %v2745_v7  ;;  %v1760_v41 = vcombine.high %v2811_v12, %v2811_v12 }
0x1877   :  { %v536_v18 = vpop.permute.xlu1 %535 }
0x1878   :  { %558 = vst.msk [vmem:[#allocation5 + $0x9] sm:$0x1] %vm338_vm2, %v536_v18  ;;  %v1178_v18 = vrot.slane %v1150_v14, %v2763_v36 }
0x187a   :  { %314 = vrot.lane.b32.xlu0 %v285_v2, %s2430_s12  ;;  %v1154_v2 = vcombine.high %v1150_v14, %v1150_v14 }
0x187b   :  { %v546_v20 = vpop.permute.xlu1 %545 }
0x187c   :  { %563 = vst.msk [vmem:[#allocation5 + $0x31] sm:$0x1] %vm338_vm2, %v546_v20  ;;  %v1186_v20 = vrot.slane %v1154_v2, %v2763_v36  ;;  %v1962_v2 = vld [vmem:[%s3152_s7 + $0x8] sm:$0xff] }
0x187e   :  { %316 = vrot.lane.b32.xlu0 %v289_v21, %s2430_s12  ;;  %v2912_v21 = vrot.slane %v1324_v17, %v2745_v7 }
0x187f   :  { %v548_v13 = vpop.permute.xlu1 %547 }
0x1880   :  { %564 = vst.msk [vmem:[#allocation5 + $0x39] sm:$0x1] %vm338_vm2, %v548_v13  ;;  %v1340_v13 = vcombine.high %v2912_v21, %v2912_v21 }
0x1882   :  { %318 = vrot.lane.b32.xlu0 %v293_v15, %s2430_s12  ;;  %v2921_v15 = vrot.slane %v2728_v62, %v2745_v7  ;;  %v1368_v24 = vrot.slane %v1340_v13, %v2745_v7 }
0x1883   :  { %v752_v5 = vpop.permute.xlu1 %751 }
0x1884   :  { %775 = vst.msk [vmem:[#allocation5 + $0x2] sm:$0x1] %vm338_vm2, %v752_v5  ;;  %v1542_v5 = vcombine.high %v2728_v62, %v2728_v62  ;;  %v1372_v25 = vcombine.high %v1368_v24, %v1368_v24  ;;  %v1557_v26 = vcombine.high %v2921_v15, %v2921_v15 }
0x1886   :  { %320 = vrot.lane.b32.xlu0 %v297_v32, %s2430_s12  ;;  %v1396_v32 = vrot.slane %v1368_v24, %v2763_v36  ;;  %v1579_v30 = vrot.slane %v1557_v26, %v2745_v7 }
0x1887   :  { %v754_v28 = vpop.permute.xlu1 %753 }
0x1888   :  { %776 = vst.msk [vmem:[#allocation5 + $0xa] sm:$0x1] %vm338_vm2, %v754_v28  ;;  %v2933_v28 = vrot.slane %v1542_v5, %v2745_v7  ;;  %v1598_v62 = vrot.slane %v1579_v30, %v2763_v36 }
0x188a   :  { %322 = vrot.lane.b32.xlu0 %v301_v29, %s2430_s12  ;;  %v1404_v29 = vrot.slane %v1372_v25, %v2763_v36 }
0x188b   :  { %v756_v31 = vpop.permute.xlu1 %755 }
0x188c   :  { %777 = vst.msk [vmem:[#allocation5 + $0x12] sm:$0x1] %vm338_vm2, %v756_v31  ;;  %v1589_v31 = vcombine.high %v1579_v30, %v1579_v30 }
0x188e   :  { %324 = vrot.lane.b32.xlu0 %v305_v35, %s2430_s12  ;;  %v1558_v35 = vcombine.high %v2933_v28, %v2933_v28 }
0x188f   :  { %v758_v38 = vpop.permute.xlu1 %757 }
0x1890   :  { %778 = vst.msk [vmem:[#allocation5 + $0x1a] sm:$0x1] %vm338_vm2, %v758_v38  ;;  %v1606_v38 = vrot.slane %v1589_v31, %v2763_v36 }
0x1892   :  { %326 = vrot.lane.b32.xlu0 %v309_v40, %s2430_s12  ;;  %v1586_v40 = vrot.slane %v1558_v35, %v2745_v7 }
0x1893   :  { %v760_v42 = vpop.permute.xlu1 %759 }
0x1894   :  { %779 = vst.msk [vmem:[#allocation5 + $0x22] sm:$0x1] %vm338_vm2, %v760_v42  ;;  %v1775_v42 = vcombine.high %v2944_v55, %v2944_v55  ;;  %v1590_v44 = vcombine.high %v1586_v40, %v1586_v40 }
0x1896   :  { %328 = vrot.lane.b32.xlu0 %v313_v43, %s2430_s12  ;;  %v1614_v43 = vrot.slane %v1586_v40, %v2763_v36  ;;  %v1622_v48 = vrot.slane %v1590_v44, %v2763_v36 }
0x1897   :  { %v762_v45 = vpop.permute.xlu1 %761 }
0x1898   :  { %780 = vst.msk [vmem:[#allocation5 + $0x2a] sm:$0x1] %vm338_vm2, %v762_v45  ;;  %v2956_v45 = vrot.slane %v1760_v41, %v2745_v7 }
0x189a   :  { %533 = vrot.lane.b32.xlu0 %v504_v46, %s2430_s12  ;;  %v1797_v46 = vrot.slane %v1775_v42, %v2745_v7  ;;  %v1776_v12 = vcombine.high %v2956_v45, %v2956_v45  ;;  %v2116_v42 = vld [vmem:[%s3153_s8] ss:$0 sm:$0xff] }
0x189b   :  { %v764_v49 = vpop.permute.xlu1 %763 }
0x189c   :  { %781 = vst.msk [vmem:[#allocation5 + $0x32] sm:$0x1] %vm338_vm2, %v764_v49  ;;  %v1964_v49 = vld [vmem:[%s3152_s7 + $0x18] sm:$0xff]  ;;  %v1816_v51 = vrot.slane %v1797_v46, %v2763_v36  ;;  %v1807_v27 = vcombine.high %v1797_v46, %v1797_v46 }
0x189d   :  { %2268 = vmatpush3.msra.mxu1 %v1964_v49 }
0x189e   :  { %537 = vrot.lane.b32.xlu0 %v512_v50, %s2430_s12  ;;  %2269 = vmatprep.subr.mxu1 %v2427_v0 }
0x18a2   :  { %539 = vrot.lane.b32.xlu0 %v516_v52, %s2430_s12 }
0x18a6   :  { %541 = vrot.lane.b32.xlu0 %v520_v53, %s2430_s12  ;;  %v1824_v53 = vrot.slane %v1807_v27, %v2763_v36 }
0x18aa   :  { %543 = vrot.lane.b32.xlu0 %v524_v33, %s2430_s12  ;;  %v2973_v33 = vrot.slane %v1776_v12, %v2745_v7  ;;  %v895_v12 = vrot.slane %v2664_v47, %v2745_v7 }
0x18ac   :  { %v1832_v57 = vrot.slane %v2973_v33, %v2763_v36 }
0x18ae   :  { %765 = vrot.lane.b32.xlu0 %v750_v34, %s2430_s12 }
0x18b2   :  { %979 = vrot.lane.b32.xlu0 %v960_v59, %s2430_s12 }
0x18b6   :  { %983 = vrot.lane.b32.xlu0 %v968_v63, %s2430_s12 }
0x18ba   :  { %1189 = vrot.lane.b32.xlu0 %v1162_v9, %s2430_s12 }
0x18be   :  { %1193 = vrot.lane.b32.xlu0 %v1170_v11, %s2430_s12 }
0x18c2   :  { %1197 = vrot.lane.b32.xlu0 %v1178_v18, %s2430_s12  ;;  %v1963_v18 = vld [vmem:[%s3152_s7 + $0x10] sm:$0xff] }
0x18c3   :  { %2270 = vmatpush3.msra.mxu1 %v1963_v18  ;;  %v1354_v18 = vrot.slane %v2912_v21, %v2745_v7 }
0x18c4   :  { %2271 = vmatprep.subr.mxu1 %v2427_v0 }
0x18c5   :  { %2272 = vmatpush3.msra.mxu1 %v1962_v2  ;;  %v1370_v2 = vcombine.high %v1354_v18, %v1354_v18 }
0x18c6   :  { %1201 = vrot.lane.b32.xlu0 %v1186_v20, %s2430_s12  ;;  %v1961_v20 = vld [vmem:[%s3152_s7] sm:$0xff]  ;;  %2273 = vmatprep.subr.mxu1 %v2427_v0 }
0x18c7   :  { %2274 = vmatpush3.msra.mxu1 %v1961_v20  ;;  %v1565_v20 = vrot.slane %v2921_v15, %v2745_v7  ;;  %v1783_v15 = vrot.slane %v2944_v55, %v2745_v7 }
0x18ca   :  { %1407 = vrot.lane.b32.xlu0 %v1380_v3, %s2430_s12 }
0x18ce   :  { %1411 = vrot.lane.b32.xlu0 %v1388_v22, %s2430_s12 }
0x18d2   :  { %1415 = vrot.lane.b32.xlu0 %v1396_v32, %s2430_s12 }
0x18d6   :  { %1419 = vrot.lane.b32.xlu0 %v1404_v29, %s2430_s12 }
0x18da   :  { %1625 = vrot.lane.b32.xlu0 %v1598_v62, %s2430_s12  ;;  %v2114_v62 = vld [vmem:[%s3151_s6] ss:$0 sm:$0xff]  ;;  %s2441_s6 = smov [#allocation6]  }
0x18db   :  { %s2081_s8 = sshll.u32 %s2441_s6, 4  ;;  %s2082_s8 = int_to_ptr.vmem [resolvable:$true] %s2081_s8 }
0x18dc   :  { %s2378_s30 = scalar_lea.vmem %s2082_s8, 128  ;;  %p2383_p6 = scmp.lt.s32.totalorder %s2082_s8, %s2082_s8 }
0x18dd   :  { %p2379_p5 = scmp.ne.s32.totalorder %s2082_s8, %s2378_s30  ;;  %p2384_p7 = scmp.lt.s32.totalorder %s2378_s30, %s2378_s30 }
0x18de   :  { %1629 = vrot.lane.b32.xlu0 %v1606_v38, %s2430_s12 }
0x18df   :  { %p2385_p8 = por %p2384_p7, %p2383_p6 }
0x18e1   :  { %p2386_p9 = pnand %p2385_p8, %p2379_p5 }
0x18e2   :  { %1633 = vrot.lane.b32.xlu0 %v1614_v43, %s2430_s12 }
0x18e6   :  { %1637 = vrot.lane.b32.xlu0 %v1622_v48, %s2430_s12 }
0x18e8   :  { %v1874_v50 = vpop.permute.xlu0 %1873 }
0x18e9   :  { %1876 = vst.msk [vmem:[#allocation6] sm:$0xff] %vm120_vm1, %v1874_v50  ;;  %2265 = vmatmul.mubr.msk.f32.vlgmr.msra.gmra.mxu0 %vm120_vm1, %v1874_v50  ;;  %v911_v50 = vrot.slane %v895_v12, %v2745_v7 }
0x18ea   :  { %1843 = vrot.lane.b32.xlu0 %v1816_v51, %s2430_s12  ;;  %v903_v51 = vcombine.high %v895_v12, %v895_v12 }
0x18eb   :  { %v940_v27 = vrot.slane %v911_v50, %v2763_v36 }
0x18ec   :  { %v315_v52 = vpop.permute.xlu0 %314 }
0x18ed   :  { %339 = vst.msk [vmem:[#allocation5] sm:$0x1] %vm338_vm2, %v315_v52  ;;  %v925_v52 = vrot.slane %v903_v51, %v2745_v7 }
0x18ee   :  { %1847 = vrot.lane.b32.xlu0 %v1824_v53, %s2430_s12 }
0x18ef   :  { %v944_v53 = vrot.slane %v925_v52, %v2763_v36 }
0x18f0   :  { %v317_v56 = vpop.permute.xlu0 %316 }
0x18f1   :  { %340 = vst.msk [vmem:[#allocation5 + $0x8] sm:$0x1] %vm338_vm2, %v317_v56  ;;  %v933_v56 = vcombine.high %v911_v50, %v911_v50 }
0x18f2   :  { %1851 = vrot.lane.b32.xlu0 %v1832_v57, %s2430_s12 }
0x18f3   :  { %v948_v57 = vrot.slane %v933_v56, %v2763_v36 }
0x18f4   :  { %v319_v34 = vpop.permute.xlu0 %318 }
0x18f5   :  { %341 = vst.msk [vmem:[#allocation5 + $0x10] sm:$0x1] %vm338_vm2, %v319_v34  ;;  %v935_v34 = vcombine.high %v925_v52, %v925_v52 }
0x18f7   :  { %v952_v47 = vrot.slane %v935_v34, %v2763_v36 }
0x18f8   :  { %v321_v23 = vpop.permute.xlu0 %320 }
0x18f9   :  { %342 = vst.msk [vmem:[#allocation5 + $0x18] sm:$0x1] %vm338_vm2, %v321_v23  ;;  %v918_v23 = vrot.slane %v2863_v54, %v2745_v7 }
0x18fc   :  { %v323_v39 = vpop.permute.xlu0 %322 }
0x18fd   :  { %343 = vst.msk [vmem:[#allocation5 + $0x20] sm:$0x1] %vm338_vm2, %v323_v39  ;;  %v956_v39 = vrot.slane %v918_v23, %v2763_v36 }
0x1900   :  { %v325_v59 = vpop.permute.xlu0 %324 }
0x1901   :  { %344 = vst.msk [vmem:[#allocation5 + $0x28] sm:$0x1] %vm338_vm2, %v325_v59  ;;  %v934_v59 = vcombine.high %v918_v23, %v918_v23 }
0x1904   :  { %v327_v60 = vpop.permute.xlu0 %326 }
0x1905   :  { %345 = vst.msk [vmem:[#allocation5 + $0x30] sm:$0x1] %vm338_vm2, %v327_v60  ;;  %v964_v60 = vrot.slane %v934_v59, %v2763_v36 }
0x1908   :  { %v329_v61 = vpop.permute.xlu0 %328 }
0x1909   :  { %346 = vst.msk [vmem:[#allocation5 + $0x38] sm:$0x1] %vm338_vm2, %v329_v61  ;;  %v1129_v61 = vrot.slane %v2875_v58, %v2745_v7 }
0x190c   :  { %v534_v63 = vpop.permute.xlu0 %533 }
0x190d   :  { %557 = vst.msk [vmem:[#allocation5 + $0x1] sm:$0x1] %vm338_vm2, %v534_v63  ;;  %v1158_v63 = vrot.slane %v1129_v61, %v2763_v36 }
0x1910   :  { %v538_v1 = vpop.permute.xlu0 %537 }
0x1911   :  { %559 = vst.msk [vmem:[#allocation5 + $0x11] sm:$0x1] %vm338_vm2, %v538_v1  ;;  %v1151_v1 = vcombine.high %v1129_v61, %v1129_v61 }
0x1913   :  { %v1166_v54 = vrot.slane %v1151_v1, %v2763_v36 }
0x1914   :  { %v540_v9 = vpop.permute.xlu0 %539 }
0x1915   :  { %560 = vst.msk [vmem:[#allocation5 + $0x19] sm:$0x1] %vm338_vm2, %v540_v9  ;;  %v1136_v9 = vrot.slane %v2889_v4, %v2745_v7 }
0x1918   :  { %v542_v16 = vpop.permute.xlu0 %541 }
0x1919   :  { %561 = vst.msk [vmem:[#allocation5 + $0x21] sm:$0x1] %vm338_vm2, %v542_v16  ;;  %v1174_v16 = vrot.slane %v1136_v9, %v2763_v36 }
0x191c   :  { %v544_v10 = vpop.permute.xlu0 %543 }
0x191d   :  { %562 = vst.msk [vmem:[#allocation5 + $0x29] sm:$0x1] %vm338_vm2, %v544_v10  ;;  %v1152_v10 = vcombine.high %v1136_v9, %v1136_v9 }
0x191f   :  { %v1182_v58 = vrot.slane %v1152_v10, %v2763_v36 }
0x1920   :  { %v766_v11 = vpop.permute.xlu0 %765 }
0x1921   :  { %782 = vst.msk [vmem:[#allocation5 + $0x3a] sm:$0x1] %vm338_vm2, %v766_v11  ;;  %v1347_v11 = vrot.slane %v2898_v6, %v2745_v7  ;;  %v1400_v6 = vrot.slane %v1370_v2, %v2763_v36 }
0x1924   :  { %v980_v14 = vpop.permute.xlu0 %979 }
0x1925   :  { %998 = vst.msk [vmem:[#allocation5 + $0x2b] sm:$0x1] %vm338_vm2, %v980_v14  ;;  %v1376_v14 = vrot.slane %v1347_v11, %v2763_v36 }
0x1928   :  { %v984_v17 = vpop.permute.xlu0 %983 }
0x1929   :  { %1000 = vst.msk [vmem:[#allocation5 + $0x3b] sm:$0x1] %vm338_vm2, %v984_v17  ;;  %v1369_v17 = vcombine.high %v1347_v11, %v1347_v11 }
0x192b   :  { %v1384_v4 = vrot.slane %v1369_v17, %v2763_v36 }
0x192c   :  { %v1190_v19 = vpop.permute.xlu0 %1189 }
0x192d   :  { %1212 = vst.msk [vmem:[#allocation5 + $0xc] sm:$0x1] %vm338_vm2, %v1190_v19  ;;  %v1392_v19 = vrot.slane %v1354_v18, %v2763_v36 }
0x1930   :  { %v1194_v8 = vpop.permute.xlu0 %1193 }
0x1931   :  { %1214 = vst.msk [vmem:[#allocation5 + $0x1c] sm:$0x1] %vm338_vm2, %v1194_v8  ;;  %v1594_v8 = vrot.slane %v1565_v20, %v2763_v36 }
0x1934   :  { %v1198_v3 = vpop.permute.xlu0 %1197 }
0x1935   :  { %1216 = vst.msk [vmem:[#allocation5 + $0x2c] sm:$0x1] %vm338_vm2, %v1198_v3  ;;  %v1587_v3 = vcombine.high %v1565_v20, %v1565_v20 }
0x1937   :  { %v1602_v21 = vrot.slane %v1587_v3, %v2763_v36 }
0x1938   :  { %v1202_v37 = vpop.permute.xlu0 %1201 }
0x1939   :  { %1218 = vst.msk [vmem:[#allocation5 + $0x3c] sm:$0x1] %vm338_vm2, %v1202_v37  ;;  %v1572_v37 = vrot.slane %v2933_v28, %v2745_v7  ;;  %v1790_v28 = vrot.slane %v2956_v45, %v2745_v7 }
0x193c   :  { %v1408_v13 = vpop.permute.xlu0 %1407 }
0x193d   :  { %1430 = vst.msk [vmem:[#allocation5 + $0xd] sm:$0x1] %vm338_vm2, %v1408_v13  ;;  %v1610_v13 = vrot.slane %v1572_v37, %v2763_v36 }
0x1940   :  { %v1412_v22 = vpop.permute.xlu0 %1411 }
0x1941   :  { %1432 = vst.msk [vmem:[#allocation5 + $0x1d] sm:$0x1] %vm338_vm2, %v1412_v22  ;;  %v1588_v22 = vcombine.high %v1572_v37, %v1572_v37 }
0x1944   :  { %v1416_v24 = vpop.permute.xlu0 %1415 }
0x1945   :  { %1434 = vst.msk [vmem:[#allocation5 + $0x2d] sm:$0x1] %vm338_vm2, %v1416_v24  ;;  %v1618_v24 = vrot.slane %v1588_v22, %v2763_v36 }
0x1948   :  { %v1420_v0 = vpop.permute.xlu0 %1419 }
0x1949   :  { %1436 = vst.msk [vmem:[#allocation5 + $0x3d] sm:$0x1] %vm338_vm2, %v1420_v0  ;;  %v1805_v0 = vcombine.high %v1783_v15, %v1783_v15 }
0x194c   :  { %v1626_v5 = vpop.permute.xlu0 %1625 }
0x194d   :  { %1648 = vst.msk [vmem:[#allocation5 + $0xe] sm:$0x1] %vm338_vm2, %v1626_v5  ;;  %v1812_v5 = vrot.slane %v1783_v15, %v2763_v36 }
0x1950   :  { %v1630_v32 = vpop.permute.xlu0 %1629 }
0x1951   :  { %1650 = vst.msk [vmem:[#allocation5 + $0x1e] sm:$0x1] %vm338_vm2, %v1630_v32  ;;  %v1820_v32 = vrot.slane %v1805_v0, %v2763_v36 }
0x1954   :  { %v1634_v25 = vpop.permute.xlu0 %1633 }
0x1955   :  { %1652 = vst.msk [vmem:[#allocation5 + $0x2e] sm:$0x1] %vm338_vm2, %v1634_v25  ;;  %v1828_v25 = vrot.slane %v1790_v28, %v2763_v36 }
0x1958   :  { %v1638_v26 = vpop.permute.xlu0 %1637 }
0x1959   :  { %1654 = vst.msk [vmem:[#allocation5 + $0x3e] sm:$0x1] %vm338_vm2, %v1638_v26  ;;  %v1806_v26 = vcombine.high %v1790_v28, %v1790_v28 }
0x195b   :  { %v1836_v55 = vrot.slane %v1806_v26, %v2763_v36 }
0x195c   :  { %v1844_v29 = vpop.permute.xlu0 %1843 }
0x195d   :  { %1866 = vst.msk [vmem:[#allocation5 + $0xf] sm:$0x1] %vm338_vm2, %v1844_v29 }
0x1960   :  { %v1848_v30 = vpop.permute.xlu0 %1847 }
0x1961   :  { %1868 = vst.msk [vmem:[#allocation5 + $0x1f] sm:$0x1] %vm338_vm2, %v1848_v30 }
0x1964   :  { %v1852_v31 = vpop.permute.xlu0 %1851 }
0x1965   :  { %1870 = vst.msk [vmem:[#allocation5 + $0x2f] sm:$0x1] %vm338_vm2, %v1852_v31 }
0x19a9   :  { %v1956_v35 = vpop.f32.mrf.mxu0 }
0x19aa   :  { %v1957_v38 = vadd.f32 %v2114_v62, %v1956_v35 }
0x19ab   :  { %v2266_v40 = vpop.f32.mrf.mxu0 }
0x19ac   :  { %v1960_v41 = vmax.f32 %v1957_v38, 0.0 }
0x19ae   :  { %2276 = vmatmul.mubr.msk.f32.vlgmr.msra.gmra.mxu1 %vm120_vm1, %v1960_v41 }
0x1a6e   :  { %v2041_v43 = vpop.f32.mrf.mxu1 }
0x1a6f   :  { %v2042_v44 = vadd.f32 %v2116_v42, %v2041_v43 }
0x1a70   :  { %v2277_v46 = vpop.f32.mrf.mxu1 }
0x1a71   :  { %v3028_v48 = vmax.f32 %v2042_v44, 0.0 }
0x1a73   :  { %v2047_v49 = vsel %vm2046_vm3, %v3028_v48, -inf }
0x1a74   :  { %2048 = vmax.xlane.f32.xlu1 %v2047_v49  ;;  %v1808_v49 = vcombine.high %v2973_v33, %v2973_v33 }
0x1a76   :  { %v1840_v50 = vrot.slane %v1808_v49, %v2763_v36 }
0x1a85   :  { %969 = vrot.lane.b32.xlu1 %v940_v27, %s2430_s12 }
0x1a89   :  { %971 = vrot.lane.b32.xlu1 %v944_v53, %s2430_s12 }
0x1a8d   :  { %973 = vrot.lane.b32.xlu1 %v948_v57, %s2430_s12 }
0x1a91   :  { %975 = vrot.lane.b32.xlu1 %v952_v47, %s2430_s12 }
0x1a95   :  { %977 = vrot.lane.b32.xlu1 %v956_v39, %s2430_s12 }
0x1a99   :  { %981 = vrot.lane.b32.xlu1 %v964_v60, %s2430_s12 }
0x1a9d   :  { %1187 = vrot.lane.b32.xlu1 %v1158_v63, %s2430_s12 }
0x1aa1   :  { %1191 = vrot.lane.b32.xlu1 %v1166_v54, %s2430_s12 }
0x1aa5   :  { %1195 = vrot.lane.b32.xlu1 %v1174_v16, %s2430_s12 }
0x1aa9   :  { %1199 = vrot.lane.b32.xlu1 %v1182_v58, %s2430_s12 }
0x1aad   :  { %1405 = vrot.lane.b32.xlu1 %v1376_v14, %s2430_s12 }
0x1ab1   :  { %1409 = vrot.lane.b32.xlu1 %v1384_v4, %s2430_s12 }
0x1ab5   :  { %1413 = vrot.lane.b32.xlu1 %v1392_v19, %s2430_s12 }
0x1ab9   :  { %1417 = vrot.lane.b32.xlu1 %v1400_v6, %s2430_s12 }
0x1abd   :  { %1623 = vrot.lane.b32.xlu1 %v1594_v8, %s2430_s12 }
0x1ac1   :  { %1627 = vrot.lane.b32.xlu1 %v1602_v21, %s2430_s12 }
0x1ac5   :  { %1631 = vrot.lane.b32.xlu1 %v1610_v13, %s2430_s12 }
0x1ac9   :  { %1635 = vrot.lane.b32.xlu1 %v1618_v24, %s2430_s12 }
0x1acd   :  { %1841 = vrot.lane.b32.xlu1 %v1812_v5, %s2430_s12 }
0x1ad1   :  { %1845 = vrot.lane.b32.xlu1 %v1820_v32, %s2430_s12 }
0x1ad5   :  { %1849 = vrot.lane.b32.xlu1 %v1828_v25, %s2430_s12 }
0x1ad9   :  { %1853 = vrot.lane.b32.xlu1 %v1836_v55, %s2430_s12 }
0x1afd   :  { %v3098_v29 = vpop.xlane.xlu1 %2048 }
0x1afe   :  { %v2050_v30 = vsub.f32 %v3028_v48, %v3098_v29 }
0x1b00   :  { %v2051_v31 = vmul.f32 1.442695, %v2050_v30 }
0x1b01   :  { %v970_v7 = vpop.permute.xlu1 %969 }
0x1b02   :  { %2354 = vpow2.f32 %v2051_v31  ;;  %993 = vst.msk [vmem:[#allocation5 + $0x3] sm:$0x1] %vm338_vm2, %v970_v7 }
0x1b05   :  { %v972_v45 = vpop.permute.xlu1 %971 }
0x1b06   :  { %994 = vst.msk [vmem:[#allocation5 + $0xb] sm:$0x1] %vm338_vm2, %v972_v45 }
0x1b09   :  { %v974_v62 = vpop.permute.xlu1 %973 }
0x1b0a   :  { %995 = vst.msk [vmem:[#allocation5 + $0x13] sm:$0x1] %vm338_vm2, %v974_v62 }
0x1b0d   :  { %v976_v35 = vpop.permute.xlu1 %975 }
0x1b0e   :  { %996 = vst.msk [vmem:[#allocation5 + $0x1b] sm:$0x1] %vm338_vm2, %v976_v35 }
0x1b0f   :  { %v2355_v38 = vpop.eup %2354 }
0x1b10   :  { %v2053_v40 = vsel %vm2046_vm3, %v2355_v38, 0.0 }
0x1b11   :  { %2054 = vadd.xlane.f32.xlu0 %v2053_v40  ;;  %v978_v41 = vpop.permute.xlu1 %977 }
0x1b12   :  { %997 = vst.msk [vmem:[#allocation5 + $0x23] sm:$0x1] %vm338_vm2, %v978_v41 }
0x1b15   :  { %v982_v42 = vpop.permute.xlu1 %981 }
0x1b16   :  { %999 = vst.msk [vmem:[#allocation5 + $0x33] sm:$0x1] %vm338_vm2, %v982_v42 }
0x1b19   :  { %v1188_v43 = vpop.permute.xlu1 %1187 }
0x1b1a   :  { %1211 = vst.msk [vmem:[#allocation5 + $0x4] sm:$0x1] %vm338_vm2, %v1188_v43 }
0x1b1d   :  { %v1192_v44 = vpop.permute.xlu1 %1191 }
0x1b1e   :  { %1213 = vst.msk [vmem:[#allocation5 + $0x14] sm:$0x1] %vm338_vm2, %v1192_v44 }
0x1b21   :  { %v1196_v46 = vpop.permute.xlu1 %1195 }
0x1b22   :  { %1215 = vst.msk [vmem:[#allocation5 + $0x24] sm:$0x1] %vm338_vm2, %v1196_v46 }
0x1b25   :  { %v1200_v12 = vpop.permute.xlu1 %1199 }
0x1b26   :  { %1217 = vst.msk [vmem:[#allocation5 + $0x34] sm:$0x1] %vm338_vm2, %v1200_v12 }
0x1b27   :  { %1855 = vrot.lane.b32.xlu0 %v1840_v50, %s2430_s12 }
0x1b29   :  { %v1406_v51 = vpop.permute.xlu1 %1405 }
0x1b2a   :  { %1429 = vst.msk [vmem:[#allocation5 + $0x5] sm:$0x1] %vm338_vm2, %v1406_v51 }
0x1b2d   :  { %v1410_v27 = vpop.permute.xlu1 %1409 }
0x1b2e   :  { %1431 = vst.msk [vmem:[#allocation5 + $0x15] sm:$0x1] %vm338_vm2, %v1410_v27 }
0x1b2f   :  { %2389 = shalt.err (!%p2386_p9)
}
0x1b30   :  { %2084 = dma.vmem_to_hbm [thread:$0]  %s2082_s8, 128, %s3156_s11, [#allocation7]  }
0x1b31   :  { %v1414_v36 = vpop.permute.xlu1 %1413  ;;  %s2442_s11 = smov [#allocation5]  }
0x1b32   :  { %1433 = vst.msk [vmem:[#allocation5 + $0x25] sm:$0x1] %vm338_vm2, %v1414_v36  ;;  %s2066_s12 = sshll.u32 %s2442_s11, 4  ;;  %s2067_s12 = int_to_ptr.vmem [resolvable:$true] %s2066_s12 }
0x1b33   :  { %s2398_s4 = scalar_lea.vmem %s2067_s12, 1024  ;;  %p2403_p11 = scmp.lt.s32.totalorder %s2067_s12, %s2067_s12 }
0x1b34   :  { %p2399_p10 = scmp.ne.s32.totalorder %s2067_s12, %s2398_s4  ;;  %p2404_p12 = scmp.lt.s32.totalorder %s2398_s4, %s2398_s4 }
0x1b35   :  { %v1418_v33 = vpop.permute.xlu1 %1417 }
0x1b36   :  { %1435 = vst.msk [vmem:[#allocation5 + $0x35] sm:$0x1] %vm338_vm2, %v1418_v33  ;;  %p2405_p13 = por %p2404_p12, %p2403_p11 }
0x1b38   :  { %p2406_p0 = pnand %p2405_p13, %p2399_p10 }
0x1b39   :  { %v1624_v52 = vpop.permute.xlu1 %1623 }
0x1b3a   :  { %1647 = vst.msk [vmem:[#allocation5 + $0x6] sm:$0x1] %vm338_vm2, %v1624_v52 }
0x1b3d   :  { %v1628_v53 = vpop.permute.xlu1 %1627 }
0x1b3e   :  { %1649 = vst.msk [vmem:[#allocation5 + $0x16] sm:$0x1] %vm338_vm2, %v1628_v53 }
0x1b41   :  { %v1632_v56 = vpop.permute.xlu1 %1631 }
0x1b42   :  { %1651 = vst.msk [vmem:[#allocation5 + $0x26] sm:$0x1] %vm338_vm2, %v1632_v56 }
0x1b45   :  { %v1636_v57 = vpop.permute.xlu1 %1635 }
0x1b46   :  { %1653 = vst.msk [vmem:[#allocation5 + $0x36] sm:$0x1] %vm338_vm2, %v1636_v57 }
0x1b49   :  { %v1842_v34 = vpop.permute.xlu1 %1841 }
0x1b4a   :  { %1865 = vst.msk [vmem:[#allocation5 + $0x7] sm:$0x1] %vm338_vm2, %v1842_v34 }
0x1b4d   :  { %v1846_v47 = vpop.permute.xlu1 %1845 }
0x1b4e   :  { %1867 = vst.msk [vmem:[#allocation5 + $0x17] sm:$0x1] %vm338_vm2, %v1846_v47 }
0x1b51   :  { %v1850_v23 = vpop.permute.xlu1 %1849 }
0x1b52   :  { %1869 = vst.msk [vmem:[#allocation5 + $0x27] sm:$0x1] %vm338_vm2, %v1850_v23 }
0x1b55   :  { %v1854_v39 = vpop.permute.xlu1 %1853 }
0x1b56   :  { %1871 = vst.msk [vmem:[#allocation5 + $0x37] sm:$0x1] %vm338_vm2, %v1854_v39 }
0x1b9a   :  { %v2055_v59 = vpop.xlane.xlu0 %2054 }
0x1b9b   :  { %2356 = vlog2.f32 %v2055_v59 }
0x1b9e   :  { %v1856_v60 = vpop.permute.xlu0 %1855 }
0x1b9f   :  { %1872 = vst.msk [vmem:[#allocation5 + $0x3f] sm:$0x1] %vm338_vm2, %v1856_v60 }
0x1ba0   :  { %2409 = shalt.err (!%p2406_p0)
}
0x1ba1   :  { %2072 = dma.vmem_to_hbm [thread:$0]  %s2067_s12, 1024, %s3154_s9, [#allocation4], %s2425_s20, %s2425_s20, %s2426_s21  }
0x1ba8   :  { %v2357_v61 = vpop.eup %2356 }
0x1ba9   :  { %v2057_v63 = vmul.f32 0.6931472, %v2357_v61 }
0x1bab   :  { %v2058_v1 = vadd.f32 %v2057_v63, %v3098_v29 }
0x1bad   :  { %v2059_v54 = vsub.f32 %v3028_v48, %v2058_v1 }
0x1baf   :  { %2060 = vst.msk [vmem:[%s3155_s10] sm:$0xff] %vm2046_vm3, %v2059_v54 }
0x1bb0   :  { %2420 = dma.done.wait [#allocation4], 1024  }
0x1bb1   :  { %2421 = vsyncadd [#allocation4], 4294966272 }
0x1bb2   :  { %2422 = dma.done.wait [#allocation7], 128  }
0x1bb3   :  { %2423 = vsyncadd [#allocation7], 4294967168 }
0x1bb4   :  { %2093 = vsyncpa [#allocation3], 1 }
0x1bb5   :  { %2094 = vsyncpa [#allocation4], 1 }
0x1bb6   :  { %2095 = vsyncpa [#allocation7], 1 }

</bundles_post_ra>
